<compile_context>
chip_gen: v7x
topology: tpu7x:2x2x1
jax: 0.10.0
libtpu: 0.0.40
codegen_flags: <defaults>
</compile_context>

<pallas_src>
import jax
import jax.numpy as jnp
from jax.experimental import pallas as pl
from jax.experimental.pallas import tpu as pltpu


def _add_relu_conv1x1_kernel(a_ref, b_ref, w_ref, o_ref, x_scratch):
    # a_ref, b_ref: (1, Cin, HW) f32 activations (one batch element, VMEM-resident
    #               across all Cout tiles because their index_map ignores j)
    # w_ref:        (TILE_COUT, Cin) slice of the 1x1 conv weight
    # o_ref:        (1, TILE_COUT, HW)
    # x_scratch:    (Cin, HW) bf16 VMEM scratch holding relu(a + b), computed once
    #               per batch element (j == 0) and reused by every Cout tile.
    @pl.when(pl.program_id(1) == 0)
    def _():
        x_scratch[...] = jnp.maximum(a_ref[0] + b_ref[0], 0.0).astype(jnp.bfloat16)

    # 1x1 conv == matmul on the MXU: bf16 operands, f32 accumulation.
    o_ref[0] = jnp.dot(
        w_ref[...].astype(jnp.bfloat16),
        x_scratch[...],
        preferred_element_type=jnp.float32,
    ).astype(o_ref.dtype)


def _pick_cout_tile(cout, max_tile=256):
    # Largest multiple of 8 that divides Cout and is <= max_tile (falls back to full Cout).
    t = min(cout, max_tile)
    t -= t % 8
    while t >= 8:
        if cout % t == 0:
            return t
        t -= 8
    return cout


def add_relu_conv1x1(x_a, x_b, weight):
    """x_a, x_b: (N, Cin, H, W) f32.  weight: (Cout, Cin, 1, 1) f32 or bf16.

    Returns relu(x_a + x_b) convolved with the 1x1 kernel: (N, Cout, H, W) in x_a.dtype.
    """
    N, C, H, W = x_a.shape
    Cout = weight.shape[0]
    HW = H * W

    # Channels-first: pure reshapes (no transposes) — NCHW is already channel-major.
    a = x_a.reshape(N, C, HW)
    b = x_b.reshape(N, C, HW)
    wm = weight.reshape(Cout, C)          # (Cout, Cin); out = wm @ relu(a + b)

    tile = _pick_cout_tile(Cout)          # 720 -> 240  => grid (N, 3)
    grid = (N, Cout // tile)

    flops = 2 * N * HW * C * Cout
    bytes_accessed = (
        4 * 2 * N * C * HW                       # two f32 activation reads
        + wm.dtype.itemsize * Cout * C           # weight read (f32 or bf16)
        + 4 * N * Cout * HW                      # f32 output write
    )

    out = pl.pallas_call(
        _add_relu_conv1x1_kernel,
        out_shape=jax.ShapeDtypeStruct((N, Cout, HW), x_a.dtype),
        grid=grid,
        in_specs=[
            # Activations: full (Cin, HW) block per batch element; constant index
            # over the Cout-tile axis so they stay resident in VMEM.
            pl.BlockSpec((1, C, HW), lambda n, j: (n, 0, 0)),
            pl.BlockSpec((1, C, HW), lambda n, j: (n, 0, 0)),
            # Weight streams in Cout tiles -> DMA overlaps MXU compute.
            pl.BlockSpec((tile, C), lambda n, j: (j, 0)),
        ],
        out_specs=pl.BlockSpec((1, tile, HW), lambda n, j: (n, j, 0)),
        scratch_shapes=[pltpu.VMEM((C, HW), jnp.bfloat16)],
        compiler_params=pltpu.CompilerParams(
            # Cout axis is a carried-scratch axis (pl.when init) -> "arbitrary".
            dimension_semantics=("parallel", "arbitrary")),
        cost_estimate=pl.CostEstimate(
            flops=flops, transcendentals=0, bytes_accessed=bytes_accessed),
    )(a, b, wm)

    # (N, Cout, HW) -> NCHW, again a free reshape (no transpose).
    return out.reshape(N, Cout, H, W)


if __name__ == "__main__":
    key = jax.random.PRNGKey(0)
    k1, k2, k3 = jax.random.split(key, 3)

    N, C, H, W = 1, 720, 14, 14           # shapes implied by the module (Conv2d(720, 720, 1))
    Cout = 720
    x169 = jax.random.normal(k1, (N, C, H, W), dtype=jnp.float32)
    x177 = jax.random.normal(k2, (N, C, H, W), dtype=jnp.float32)
    # Deterministic synthetic weight for Conv2d(720, 720, kernel_size=1, bias=False)
    weight = jax.random.normal(k3, (Cout, C, 1, 1), dtype=jnp.float32) * 0.02

    out = jax.block_until_ready(add_relu_conv1x1(x169, x177, weight))
    assert out.shape == (N, Cout, H, W)

    x = jnp.maximum(x169 + x177, 0.0)
    wmat = weight.reshape(Cout, C)

    # Tight check against a reference with matching precision (bf16 operands, f32 acc).
    ref_bf16 = jnp.einsum(
        "oc,nchw->nohw",
        wmat.astype(jnp.bfloat16), x.astype(jnp.bfloat16),
        preferred_element_type=jnp.float32)
    err_bf16 = float(jnp.max(jnp.abs(out - ref_bf16)))
    assert jnp.allclose(out, ref_bf16, atol=1e-3, rtol=1e-3), err_bf16

    # Sanity check against the full-f32 PyTorch-equivalent reference
    # (bf16 MXU operands are a small, expected numerics delta).
    ref_f32 = jnp.einsum("oc,nchw->nohw", wmat, x)
    err_f32 = float(jnp.max(jnp.abs(out - ref_f32)))
    assert jnp.allclose(out, ref_f32, atol=5e-2, rtol=5e-2), err_f32

    print("KERNEL_OK")
</pallas_src>

<mosaic_0001>
module attributes {stable_mosaic.version = 11 : i64} {
  func.func @_add_relu_conv1x1_kernel(%arg0: i32, %arg1: i32, %arg2: memref<1x720x196xf32, #tpu.memory_space<vmem>>, %arg3: memref<1x720x196xf32, #tpu.memory_space<vmem>>, %arg4: memref<240x720xf32, #tpu.memory_space<vmem>>, %arg5: memref<1x240x196xf32, #tpu.memory_space<vmem>>, %arg6: memref<720x196xbf16, #tpu.memory_space<vmem>>) attributes {dimension_semantics = [#tpu.dimension_semantics<parallel>, #tpu.dimension_semantics<arbitrary>], iteration_bounds = array<i64: 1, 3>, scalar_prefetch = 0 : i64, scratch_operands = 1 : i64, tpu.core_type = #tpu.core_type<tc>, window_params = [{transform_indices = @transform_0, window_bounds = array<i64: 1, 720, 196>}, {transform_indices = @transform_1, window_bounds = array<i64: 1, 720, 196>}, {transform_indices = @transform_2, window_bounds = array<i64: 240, 720>}, {transform_indices = @transform_3, window_bounds = array<i64: 1, 240, 196>}]} {
    %c0_i32 = arith.constant 0 : i32
    %0 = arith.cmpi eq, %arg1, %c0_i32 : i32
    %1 = arith.extui %0 : i1 to i32
    %c0_i32_0 = arith.constant 0 : i32
    %2 = arith.cmpi ne, %1, %c0_i32_0 : i32
    scf.if %2 {
      %c0_7 = arith.constant 0 : index
      %c0_8 = arith.constant 0 : index
      %c0_9 = arith.constant 0 : index
      %10 = vector.load %arg2[%c0_7, %c0_8, %c0_9] : memref<1x720x196xf32, #tpu.memory_space<vmem>>, vector<1x720x196xf32>
      %11 = vector.shape_cast %10 : vector<1x720x196xf32> to vector<720x196xf32>
      %c0_10 = arith.constant 0 : index
      %c0_11 = arith.constant 0 : index
      %c0_12 = arith.constant 0 : index
      %12 = vector.load %arg3[%c0_10, %c0_11, %c0_12] : memref<1x720x196xf32, #tpu.memory_space<vmem>>, vector<1x720x196xf32>
      %13 = vector.shape_cast %12 : vector<1x720x196xf32> to vector<720x196xf32>
      %14 = arith.addf %11, %13 : vector<720x196xf32>
      %cst_13 = arith.constant 0.000000e+00 : f32
      %15 = vector.broadcast %cst_13 : f32 to vector<720x196xf32>
      %16 = arith.maximumf %14, %15 : vector<720x196xf32>
      %17 = arith.truncf %16 : vector<720x196xf32> to vector<720x196xbf16>
      %c0_14 = arith.constant 0 : index
      %c0_15 = arith.constant 0 : index
      %18 = vector.load %arg6[%c0_14, %c0_15] : memref<720x196xbf16, #tpu.memory_space<vmem>>, vector<720x196xbf16>
      tpu.vector_store %arg6[%c0_14, %c0_15], %17 {strides = array<i32>} : memref<720x196xbf16, #tpu.memory_space<vmem>>, vector<720x196xbf16>,
    } else {
    }
    %c0 = arith.constant 0 : index
    %c0_1 = arith.constant 0 : index
    %3 = vector.load %arg4[%c0, %c0_1] : memref<240x720xf32, #tpu.memory_space<vmem>>, vector<240x720xf32>
    %4 = arith.truncf %3 : vector<240x720xf32> to vector<240x720xbf16>
    %c0_2 = arith.constant 0 : index
    %c0_3 = arith.constant 0 : index
    %5 = vector.load %arg6[%c0_2, %c0_3] : memref<720x196xbf16, #tpu.memory_space<vmem>>, vector<720x196xbf16>
    %cst = arith.constant dense<0.000000e+00> : vector<240x196xf32>
    %6 = tpu.matmul %4, %5, %cst {dimension_numbers = #tpu.dot_dimension_numbers<[1], [0], [0], [1], [0, 0, 1, 1], [], []>} : vector<240x720xbf16>, vector<720x196xbf16>, vector<240x196xf32> -> vector<240x196xf32>
    %c0_4 = arith.constant 0 : index
    %c0_5 = arith.constant 0 : index
    %c0_6 = arith.constant 0 : index
    %7 = vector.load %arg5[%c0_4, %c0_5, %c0_6] : memref<1x240x196xf32, #tpu.memory_space<vmem>>, vector<1x240x196xf32>
    %8 = vector.shape_cast %7 : vector<1x240x196xf32> to vector<240x196xf32>
    %9 = vector.shape_cast %6 : vector<240x196xf32> to vector<1x240x196xf32>
    tpu.vector_store %arg5[%c0_4, %c0_5, %c0_6], %9 {strides = array<i32>} : memref<1x240x196xf32, #tpu.memory_space<vmem>>, vector<1x240x196xf32>,
    return
  }
  func.func @transform_0(%arg0: i32, %arg1: i32) -> (i32, i32, i32) {
    %c0_i32 = arith.constant 0 : i32
    %c0_i32_0 = arith.constant 0 : i32
    %c0_i32_1 = arith.constant 0 : i32
    return %arg0, %c0_i32, %c0_i32_0 : i32, i32, i32
  }
  func.func @transform_1(%arg0: i32, %arg1: i32) -> (i32, i32, i32) {
    %c0_i32 = arith.constant 0 : i32
    %c0_i32_0 = arith.constant 0 : i32
    %c0_i32_1 = arith.constant 0 : i32
    return %arg0, %c0_i32, %c0_i32_0 : i32, i32, i32
  }
  func.func @transform_2(%arg0: i32, %arg1: i32) -> (i32, i32) {
    %c0_i32 = arith.constant 0 : i32
    %c0_i32_0 = arith.constant 0 : i32
    return %arg1, %c0_i32 : i32, i32
  }
  func.func @transform_3(%arg0: i32, %arg1: i32) -> (i32, i32, i32) {
    %c0_i32 = arith.constant 0 : i32
    %c0_i32_0 = arith.constant 0 : i32
    return %arg0, %arg1, %c0_i32 : i32, i32, i32
  }
}

</mosaic_0001>

<bundles_post_ra>
// kernel: tpu_custom_call.1
= control target key start
LH: loop header
LB: loop body
LE: loop exit
PB: predicated region body
PF: predicated region fallthrough
CT: control target
= control target key end

     0   :  { %s2530_s12 = smov 0   ;;  %s2532_s13 = smov 0   ;;  %s4138_s0 = inlined_call_operand.vmem [shape: f32[1,720,196], index: 0, kind: input, shape index: {}]   ;;  %s4139_s1 = inlined_call_operand.vmem [shape: f32[1,720,196], index: 1, kind: input, shape index: {}]   ;;  %s4140_s2 = inlined_call_operand.vmem [shape: f32[720,720], index: 2, kind: input, shape index: {}]   ;;  %s4141_s3 = inlined_call_operand.vmem [shape: f32[1,720,196], index: 3, kind: output, shape index: {}]  }
   0x1   :  { %s2534_s14 = smov 0  }
   0x2 LB: > { %s22_s15 = sadd.s32 1, %s2504_s13  ;;  %p2286_p0 = scmp.ge.s32.totalorder %s2508_s14, 1  ;;  %s2508_s14 = sphi %s2534_s14, %s13_s14   ;;  %s2504_s13 = sphi %s2532_s13, %s4143_s13   ;;  %s2500_s12 = sphi %s2530_s12, %s4142_s12  }
   0x3   : > { %p23_p1 = scmp.ge.s32.totalorder %s22_s15, 3  ;;  %p173_p2 = scmp.lt.s32.totalorder %s2508_s14, 4 }
   0x5   : > { %s4145_s15 = smov (%p23_p1, %s22_s15), 0  ;;  %p174_p3 = pnand %p2286_p0, %p173_p2 }
   0x6   : > { %s223_s16 = smul.u32 (!%p174_p3), 30, %s2500_s12  ;;  %p2290_p5 = scmp.ne.s32.totalorder (!%p174_p3), %s2500_s12, 0 }
   0x7   : > { %177 = sbr.rel (%p174_p3) target bundleno = 602 (0x25a), region = 32 }
   0x8   : > { %p224_p4 = scmp.lt.s32.totalorder (!%p174_p3), %s223_s16, 89 }
   0xe   : > { %s4147_s16 = smov (!%p224_p4, %s223_s16), 89  ;;  %245 = sbr.rel (%p2290_p5) target bundleno = 143 (0x8f), region = 36 }
   0xf   : > { %s2461_s17 = smul.u32 48, %s4147_s16  ;;  %s2308_s18 = sshll.u32 %s4147_s16, 4  ;;  %v246_v0 = vld [vmem:[%s4138_s0] sm:$0xff] (!%p2290_p5)  ;;  %v248_v1 = vld [vmem:[%s4138_s0 + $0x10] sm:$0xff] (!%p2290_p5)  ;;  %v247_v5 = vld [vmem:[%s4138_s0 + $0x8] sm:$0xff] (!%p2290_p5)  ;;  %vm1057_vm0 = vcmask (!%p2290_p5), 556032  }
  0x10   : > { %s2551_s21 = scalar_lea.vmem %s4141_s3, %s2308_s18  ;;  %v426_v2 = vld [vmem:[%s4139_s1] sm:$0xff] (!%p2290_p5)  ;;  %v428_v3 = vld [vmem:[%s4139_s1 + $0x10] sm:$0xff] (!%p2290_p5)  ;;  %v249_v6 = vld [vmem:[%s4138_s0 + $0x18] sm:$0xff] (!%p2290_p5) }
  0x11   : > { %s2556_s24 = scalar_lea.vmem %s4140_s2, %s2461_s17  ;;  %v606_v4 = vadd.f32 (!%p2290_p5), %v426_v2, %v246_v0  ;;  %v608_v7 = vadd.f32 (!%p2290_p5), %v428_v3, %v248_v1  ;;  %v427_v8 = vld [vmem:[%s4139_s1 + $0x8] sm:$0xff] (!%p2290_p5)  ;;  %v429_v9 = vld [vmem:[%s4139_s1 + $0x18] sm:$0xff] (!%p2290_p5)  ;;  %v250_v10 = vld [vmem:[%s4138_s0 + $0x20] sm:$0xff] (!%p2290_p5) }
  0x12   : > { %v607_v12 = vadd.f32 (!%p2290_p5), %v427_v8, %v247_v5  ;;  %v609_v13 = vadd.f32 (!%p2290_p5), %v429_v9, %v249_v6  ;;  %v252_v14 = vld [vmem:[%s4138_s0 + $0x30] sm:$0xff] (!%p2290_p5)  ;;  %v430_v15 = vld [vmem:[%s4139_s1 + $0x20] sm:$0xff] (!%p2290_p5)  ;;  %v251_v20 = vld [vmem:[%s4138_s0 + $0x28] sm:$0xff] (!%p2290_p5) }
  0x13   : > { %v786_v11 = vmax.f32 (!%p2290_p5), %v606_v4, 0.0  ;;  %v432_v16 = vld [vmem:[%s4139_s1 + $0x30] sm:$0xff] (!%p2290_p5)  ;;  %v788_v17 = vmax.f32 (!%p2290_p5), %v608_v7, 0.0  ;;  %v610_v18 = vadd.f32 (!%p2290_p5), %v430_v15, %v250_v10  ;;  %v253_v21 = vld [vmem:[%s4138_s0 + $0x38] sm:$0xff] (!%p2290_p5)  ;;  %v431_v22 = vld [vmem:[%s4139_s1 + $0x28] sm:$0xff] (!%p2290_p5) }
  0x14   : > { %v612_v19 = vadd.f32 (!%p2290_p5), %v432_v16, %v252_v14  ;;  %v787_v23 = vmax.f32 (!%p2290_p5), %v607_v12, 0.0  ;;  %v789_v24 = vmax.f32 (!%p2290_p5), %v609_v13, 0.0  ;;  %v433_v25 = vld [vmem:[%s4139_s1 + $0x38] sm:$0xff] (!%p2290_p5)  ;;  %v611_v26 = vadd.f32 (!%p2290_p5), %v431_v22, %v251_v20  ;;  %v254_v27 = vld [vmem:[%s4138_s0 + $0x40] sm:$0xff] (!%p2290_p5)  ;;  %v256_v28 = vld [vmem:[%s4138_s0 + $0x50] sm:$0xff] (!%p2290_p5) }
  0x15   : > { %v966_v29 = vpack.c.bf16 %v788_v17, %v786_v11  ;;  %v790_v30 = vmax.f32 %v610_v18, 0.0  ;;  %v613_v32 = vadd.f32 %v433_v25, %v253_v21  ;;  %v434_v33 = vld [vmem:[%s4139_s1 + $0x40] sm:$0xff]  ;;  %v436_v34 = vld [vmem:[%s4139_s1 + $0x50] sm:$0xff]  ;;  %v255_v35 = vld [vmem:[%s4138_s0 + $0x48] sm:$0xff] }
  0x16   : > { %v792_v31 = vmax.f32 %v612_v19, 0.0  ;;  %v967_v36 = vpack.c.bf16 %v789_v24, %v787_v23  ;;  %v791_v37 = vmax.f32 %v611_v26, 0.0  ;;  %v614_v38 = vadd.f32 %v434_v33, %v254_v27  ;;  %v257_v40 = vld [vmem:[%s4138_s0 + $0x58] sm:$0xff]  ;;  %v435_v41 = vld [vmem:[%s4139_s1 + $0x48] sm:$0xff]  ;;  %v258_v47 = vld [vmem:[%s4138_s0 + $0x60] sm:$0xff] }
  0x17   : > { %v616_v39 = vadd.f32 %v436_v34, %v256_v28  ;;  %v437_v42 = vld [vmem:[%s4139_s1 + $0x58] sm:$0xff]  ;;  %1056 = vst [vmem:[#allocation2] sm:$0xff] %v966_v29  ;;  %v793_v44 = vmax.f32 %v613_v32, 0.0  ;;  %v615_v45 = vadd.f32 %v435_v41, %v255_v35  ;;  %v260_v48 = vld [vmem:[%s4138_s0 + $0x70] sm:$0xff]  ;;  %v438_v49 = vld [vmem:[%s4139_s1 + $0x60] sm:$0xff] }
  0x18   : > { %v968_v43 = vpack.c.bf16 %v792_v31, %v790_v30  ;;  %v617_v46 = vadd.f32 %v437_v42, %v257_v40  ;;  %1058 = vst.msk [vmem:[#allocation2 + $0x8] sm:$0xff] %vm1057_vm0, %v967_v36  ;;  %v794_v50 = vmax.f32 %v614_v38, 0.0  ;;  %v440_v52 = vld [vmem:[%s4139_s1 + $0x70] sm:$0xff]  ;;  %v618_v53 = vadd.f32 %v438_v49, %v258_v47  ;;  %v259_v54 = vld [vmem:[%s4138_s0 + $0x68] sm:$0xff]  ;;  %v261_v55 = vld [vmem:[%s4138_s0 + $0x78] sm:$0xff] }
  0x19   : > { %v796_v51 = vmax.f32 %v616_v39, 0.0  ;;  %v969_v56 = vpack.c.bf16 %v793_v44, %v791_v37  ;;  %v795_v57 = vmax.f32 %v615_v45, 0.0  ;;  %v620_v59 = vadd.f32 %v440_v52, %v260_v48  ;;  %v439_v60 = vld [vmem:[%s4139_s1 + $0x68] sm:$0xff]  ;;  %v441_v61 = vld [vmem:[%s4139_s1 + $0x78] sm:$0xff]  ;;  %v262_v62 = vld [vmem:[%s4138_s0 + $0x80] sm:$0xff] }
  0x1a   : > { %1059 = vst [vmem:[#allocation2 + $0x10] sm:$0xff] %v968_v43  ;;  %v797_v58 = vmax.f32 %v617_v46, 0.0  ;;  %v798_v0 = vmax.f32 %v618_v53, 0.0  ;;  %v619_v1 = vadd.f32 %v439_v60, %v259_v54  ;;  %v621_v2 = vadd.f32 %v441_v61, %v261_v55  ;;  %v264_v3 = vld [vmem:[%s4138_s0 + $0x90] sm:$0xff]  ;;  %v442_v4 = vld [vmem:[%s4139_s1 + $0x80] sm:$0xff]  ;;  %v263_v10 = vld [vmem:[%s4138_s0 + $0x88] sm:$0xff] }
  0x1b   : > { %v970_v63 = vpack.c.bf16 %v796_v51, %v794_v50  ;;  %v444_v5 = vld [vmem:[%s4139_s1 + $0x90] sm:$0xff]  ;;  %1060 = vst.msk [vmem:[#allocation2 + $0x18] sm:$0xff] %vm1057_vm0, %v969_v56  ;;  %v800_v7 = vmax.f32 %v620_v59, 0.0  ;;  %v622_v8 = vadd.f32 %v442_v4, %v262_v62  ;;  %v265_v11 = vld [vmem:[%s4138_s0 + $0x98] sm:$0xff]  ;;  %v443_v12 = vld [vmem:[%s4139_s1 + $0x88] sm:$0xff] }
  0x1c   : > { %v971_v6 = vpack.c.bf16 %v797_v58, %v795_v57  ;;  %v624_v9 = vadd.f32 %v444_v5, %v264_v3  ;;  %v799_v13 = vmax.f32 %v619_v1, 0.0  ;;  %v801_v14 = vmax.f32 %v621_v2, 0.0  ;;  %v445_v15 = vld [vmem:[%s4139_s1 + $0x98] sm:$0xff]  ;;  %v266_v17 = vld [vmem:[%s4138_s0 + $0xa0] sm:$0xff]  ;;  %v268_v18 = vld [vmem:[%s4138_s0 + $0xb0] sm:$0xff] }
  0x1d   : > { %1061 = vst [vmem:[#allocation2 + $0x20] sm:$0xff] %v970_v63  ;;  %v623_v16 = vadd.f32 %v443_v12, %v263_v10  ;;  %v972_v19 = vpack.c.bf16 %v800_v7, %v798_v0  ;;  %v802_v20 = vmax.f32 %v622_v8, 0.0  ;;  %v625_v22 = vadd.f32 %v445_v15, %v265_v11  ;;  %v446_v23 = vld [vmem:[%s4139_s1 + $0xa0] sm:$0xff]  ;;  %v448_v24 = vld [vmem:[%s4139_s1 + $0xb0] sm:$0xff]  ;;  %v267_v25 = vld [vmem:[%s4138_s0 + $0xa8] sm:$0xff] }
  0x1e   : > { %1062 = vst.msk [vmem:[#allocation2 + $0x28] sm:$0xff] %vm1057_vm0, %v971_v6  ;;  %v804_v21 = vmax.f32 %v624_v9, 0.0  ;;  %v973_v26 = vpack.c.bf16 %v801_v14, %v799_v13  ;;  %v626_v28 = vadd.f32 %v446_v23, %v266_v17  ;;  %v628_v29 = vadd.f32 %v448_v24, %v268_v18  ;;  %v269_v30 = vld [vmem:[%s4138_s0 + $0xb8] sm:$0xff]  ;;  %v447_v31 = vld [vmem:[%s4139_s1 + $0xa8] sm:$0xff]  ;;  %v270_v37 = vld [vmem:[%s4138_s0 + $0xc0] sm:$0xff] }
  0x1f   : > { %v803_v27 = vmax.f32 %v623_v16, 0.0  ;;  %v449_v32 = vld [vmem:[%s4139_s1 + $0xb8] sm:$0xff]  ;;  %1063 = vst [vmem:[#allocation2 + $0x30] sm:$0xff] %v972_v19  ;;  %v805_v34 = vmax.f32 %v625_v22, 0.0  ;;  %v627_v35 = vadd.f32 %v447_v31, %v267_v25  ;;  %v272_v38 = vld [vmem:[%s4138_s0 + $0xd0] sm:$0xff]  ;;  %v450_v39 = vld [vmem:[%s4139_s1 + $0xc0] sm:$0xff] }
  0x20   : > { %v974_v33 = vpack.c.bf16 %v804_v21, %v802_v20  ;;  %v629_v36 = vadd.f32 %v449_v32, %v269_v30  ;;  %1064 = vst.msk [vmem:[#allocation2 + $0x38] sm:$0xff] %vm1057_vm0, %v973_v26  ;;  %v806_v40 = vmax.f32 %v626_v28, 0.0  ;;  %v808_v41 = vmax.f32 %v628_v29, 0.0  ;;  %v452_v42 = vld [vmem:[%s4139_s1 + $0xd0] sm:$0xff]  ;;  %v271_v44 = vld [vmem:[%s4138_s0 + $0xc8] sm:$0xff]  ;;  %v273_v45 = vld [vmem:[%s4138_s0 + $0xd8] sm:$0xff] }
  0x21   : > { %v630_v43 = vadd.f32 %v450_v39, %v270_v37  ;;  %v975_v46 = vpack.c.bf16 %v805_v34, %v803_v27  ;;  %v807_v47 = vmax.f32 %v627_v35, 0.0  ;;  %v632_v49 = vadd.f32 %v452_v42, %v272_v38  ;;  %v451_v50 = vld [vmem:[%s4139_s1 + $0xc8] sm:$0xff]  ;;  %v453_v51 = vld [vmem:[%s4139_s1 + $0xd8] sm:$0xff]  ;;  %v274_v52 = vld [vmem:[%s4138_s0 + $0xe0] sm:$0xff] }
  0x22   : > { %1065 = vst [vmem:[#allocation2 + $0x40] sm:$0xff] %v974_v33  ;;  %v809_v48 = vmax.f32 %v629_v36, 0.0  ;;  %v976_v53 = vpack.c.bf16 %v808_v41, %v806_v40  ;;  %v631_v55 = vadd.f32 %v451_v50, %v271_v44  ;;  %v633_v56 = vadd.f32 %v453_v51, %v273_v45  ;;  %v276_v57 = vld [vmem:[%s4138_s0 + $0xf0] sm:$0xff]  ;;  %v454_v58 = vld [vmem:[%s4139_s1 + $0xe0] sm:$0xff]  ;;  %v275_v0 = vld [vmem:[%s4138_s0 + $0xe8] sm:$0xff] }
  0x23   : > { %v810_v54 = vmax.f32 %v630_v43, 0.0  ;;  %v456_v59 = vld [vmem:[%s4139_s1 + $0xf0] sm:$0xff]  ;;  %1066 = vst.msk [vmem:[#allocation2 + $0x48] sm:$0xff] %vm1057_vm0, %v975_v46  ;;  %v812_v61 = vmax.f32 %v632_v49, 0.0  ;;  %v634_v62 = vadd.f32 %v454_v58, %v274_v52  ;;  %v277_v1 = vld [vmem:[%s4138_s0 + $0xf8] sm:$0xff]  ;;  %v455_v2 = vld [vmem:[%s4139_s1 + $0xe8] sm:$0xff] }
  0x24   : > { %v977_v60 = vpack.c.bf16 %v809_v48, %v807_v47  ;;  %v636_v63 = vadd.f32 %v456_v59, %v276_v57  ;;  %1067 = vst [vmem:[#allocation2 + $0x50] sm:$0xff] %v976_v53  ;;  %v811_v3 = vmax.f32 %v631_v55, 0.0  ;;  %v813_v4 = vmax.f32 %v633_v56, 0.0  ;;  %v457_v5 = vld [vmem:[%s4139_s1 + $0xf8] sm:$0xff]  ;;  %v278_v7 = vld [vmem:[%s4138_s0 + $0x100] sm:$0xff]  ;;  %v280_v8 = vld [vmem:[%s4138_s0 + $0x110] sm:$0xff] }
  0x25   : > { %v635_v6 = vadd.f32 %v455_v2, %v275_v0  ;;  %v978_v9 = vpack.c.bf16 %v812_v61, %v810_v54  ;;  %v814_v10 = vmax.f32 %v634_v62, 0.0  ;;  %v637_v12 = vadd.f32 %v457_v5, %v277_v1  ;;  %v458_v13 = vld [vmem:[%s4139_s1 + $0x100] sm:$0xff]  ;;  %v460_v14 = vld [vmem:[%s4139_s1 + $0x110] sm:$0xff]  ;;  %v279_v15 = vld [vmem:[%s4138_s0 + $0x108] sm:$0xff] }
  0x26   : > { %1068 = vst.msk [vmem:[#allocation2 + $0x58] sm:$0xff] %vm1057_vm0, %v977_v60  ;;  %v816_v11 = vmax.f32 %v636_v63, 0.0  ;;  %v979_v16 = vpack.c.bf16 %v813_v4, %v811_v3  ;;  %v638_v18 = vadd.f32 %v458_v13, %v278_v7  ;;  %v640_v19 = vadd.f32 %v460_v14, %v280_v8  ;;  %v281_v20 = vld [vmem:[%s4138_s0 + $0x118] sm:$0xff]  ;;  %v459_v21 = vld [vmem:[%s4139_s1 + $0x108] sm:$0xff]  ;;  %v282_v27 = vld [vmem:[%s4138_s0 + $0x120] sm:$0xff] }
  0x27   : > { %v815_v17 = vmax.f32 %v635_v6, 0.0  ;;  %v461_v22 = vld [vmem:[%s4139_s1 + $0x118] sm:$0xff]  ;;  %1069 = vst [vmem:[#allocation2 + $0x60] sm:$0xff] %v978_v9  ;;  %v817_v24 = vmax.f32 %v637_v12, 0.0  ;;  %v639_v25 = vadd.f32 %v459_v21, %v279_v15  ;;  %v284_v28 = vld [vmem:[%s4138_s0 + $0x130] sm:$0xff]  ;;  %v462_v29 = vld [vmem:[%s4139_s1 + $0x120] sm:$0xff] }
  0x28   : > { %v980_v23 = vpack.c.bf16 %v816_v11, %v814_v10  ;;  %v641_v26 = vadd.f32 %v461_v22, %v281_v20  ;;  %1070 = vst.msk [vmem:[#allocation2 + $0x68] sm:$0xff] %vm1057_vm0, %v979_v16  ;;  %v818_v30 = vmax.f32 %v638_v18, 0.0  ;;  %v820_v31 = vmax.f32 %v640_v19, 0.0  ;;  %v464_v32 = vld [vmem:[%s4139_s1 + $0x130] sm:$0xff]  ;;  %v283_v34 = vld [vmem:[%s4138_s0 + $0x128] sm:$0xff]  ;;  %v285_v35 = vld [vmem:[%s4138_s0 + $0x138] sm:$0xff] }
  0x29   : > { %v642_v33 = vadd.f32 %v462_v29, %v282_v27  ;;  %v981_v36 = vpack.c.bf16 %v817_v24, %v815_v17  ;;  %v819_v37 = vmax.f32 %v639_v25, 0.0  ;;  %v644_v39 = vadd.f32 %v464_v32, %v284_v28  ;;  %v463_v40 = vld [vmem:[%s4139_s1 + $0x128] sm:$0xff]  ;;  %v465_v41 = vld [vmem:[%s4139_s1 + $0x138] sm:$0xff]  ;;  %v286_v42 = vld [vmem:[%s4138_s0 + $0x140] sm:$0xff] }
  0x2a   : > { %1071 = vst [vmem:[#allocation2 + $0x70] sm:$0xff] %v980_v23  ;;  %v821_v38 = vmax.f32 %v641_v26, 0.0  ;;  %v982_v43 = vpack.c.bf16 %v820_v31, %v818_v30  ;;  %v643_v45 = vadd.f32 %v463_v40, %v283_v34  ;;  %v645_v46 = vadd.f32 %v465_v41, %v285_v35  ;;  %v288_v47 = vld [vmem:[%s4138_s0 + $0x150] sm:$0xff]  ;;  %v466_v48 = vld [vmem:[%s4139_s1 + $0x140] sm:$0xff]  ;;  %v287_v54 = vld [vmem:[%s4138_s0 + $0x148] sm:$0xff] }
  0x2b   : > { %v822_v44 = vmax.f32 %v642_v33, 0.0  ;;  %v468_v49 = vld [vmem:[%s4139_s1 + $0x150] sm:$0xff]  ;;  %1072 = vst.msk [vmem:[#allocation2 + $0x78] sm:$0xff] %vm1057_vm0, %v981_v36  ;;  %v824_v51 = vmax.f32 %v644_v39, 0.0  ;;  %v646_v52 = vadd.f32 %v466_v48, %v286_v42  ;;  %v289_v55 = vld [vmem:[%s4138_s0 + $0x158] sm:$0xff]  ;;  %v467_v56 = vld [vmem:[%s4139_s1 + $0x148] sm:$0xff] }
  0x2c   : > { %v983_v50 = vpack.c.bf16 %v821_v38, %v819_v37  ;;  %v648_v53 = vadd.f32 %v468_v49, %v288_v47  ;;  %1073 = vst [vmem:[#allocation2 + $0x80] sm:$0xff] %v982_v43  ;;  %v823_v57 = vmax.f32 %v643_v45, 0.0  ;;  %v825_v58 = vmax.f32 %v645_v46, 0.0  ;;  %v469_v59 = vld [vmem:[%s4139_s1 + $0x158] sm:$0xff]  ;;  %v290_v61 = vld [vmem:[%s4138_s0 + $0x160] sm:$0xff]  ;;  %v292_v62 = vld [vmem:[%s4138_s0 + $0x170] sm:$0xff] }
  0x2d   : > { %v647_v60 = vadd.f32 %v467_v56, %v287_v54  ;;  %v984_v63 = vpack.c.bf16 %v824_v51, %v822_v44  ;;  %v826_v0 = vmax.f32 %v646_v52, 0.0  ;;  %v649_v2 = vadd.f32 %v469_v59, %v289_v55  ;;  %v470_v3 = vld [vmem:[%s4139_s1 + $0x160] sm:$0xff]  ;;  %v472_v4 = vld [vmem:[%s4139_s1 + $0x170] sm:$0xff]  ;;  %v291_v5 = vld [vmem:[%s4138_s0 + $0x168] sm:$0xff] }
  0x2e   : > { %1074 = vst.msk [vmem:[#allocation2 + $0x88] sm:$0xff] %vm1057_vm0, %v983_v50  ;;  %v828_v1 = vmax.f32 %v648_v53, 0.0  ;;  %v985_v6 = vpack.c.bf16 %v825_v58, %v823_v57  ;;  %v650_v8 = vadd.f32 %v470_v3, %v290_v61  ;;  %v652_v9 = vadd.f32 %v472_v4, %v292_v62  ;;  %v293_v10 = vld [vmem:[%s4138_s0 + $0x178] sm:$0xff]  ;;  %v471_v11 = vld [vmem:[%s4139_s1 + $0x168] sm:$0xff]  ;;  %v294_v17 = vld [vmem:[%s4138_s0 + $0x180] sm:$0xff] }
  0x2f   : > { %v827_v7 = vmax.f32 %v647_v60, 0.0  ;;  %v473_v12 = vld [vmem:[%s4139_s1 + $0x178] sm:$0xff]  ;;  %1075 = vst [vmem:[#allocation2 + $0x90] sm:$0xff] %v984_v63  ;;  %v829_v14 = vmax.f32 %v649_v2, 0.0  ;;  %v651_v15 = vadd.f32 %v471_v11, %v291_v5  ;;  %v296_v18 = vld [vmem:[%s4138_s0 + $0x190] sm:$0xff]  ;;  %v474_v19 = vld [vmem:[%s4139_s1 + $0x180] sm:$0xff] }
  0x30   : > { %v986_v13 = vpack.c.bf16 %v828_v1, %v826_v0  ;;  %v653_v16 = vadd.f32 %v473_v12, %v293_v10  ;;  %1076 = vst.msk [vmem:[#allocation2 + $0x98] sm:$0xff] %vm1057_vm0, %v985_v6  ;;  %v830_v20 = vmax.f32 %v650_v8, 0.0  ;;  %v832_v21 = vmax.f32 %v652_v9, 0.0  ;;  %v476_v22 = vld [vmem:[%s4139_s1 + $0x190] sm:$0xff]  ;;  %v295_v24 = vld [vmem:[%s4138_s0 + $0x188] sm:$0xff]  ;;  %v297_v25 = vld [vmem:[%s4138_s0 + $0x198] sm:$0xff] }
  0x31   : > { %v654_v23 = vadd.f32 %v474_v19, %v294_v17  ;;  %v987_v26 = vpack.c.bf16 %v829_v14, %v827_v7  ;;  %v831_v27 = vmax.f32 %v651_v15, 0.0  ;;  %v656_v29 = vadd.f32 %v476_v22, %v296_v18  ;;  %v475_v30 = vld [vmem:[%s4139_s1 + $0x188] sm:$0xff]  ;;  %v477_v31 = vld [vmem:[%s4139_s1 + $0x198] sm:$0xff]  ;;  %v298_v32 = vld [vmem:[%s4138_s0 + $0x1a0] sm:$0xff] }
  0x32   : > { %1077 = vst [vmem:[#allocation2 + $0xa0] sm:$0xff] %v986_v13  ;;  %v833_v28 = vmax.f32 %v653_v16, 0.0  ;;  %v988_v33 = vpack.c.bf16 %v832_v21, %v830_v20  ;;  %v655_v35 = vadd.f32 %v475_v30, %v295_v24  ;;  %v657_v36 = vadd.f32 %v477_v31, %v297_v25  ;;  %v300_v37 = vld [vmem:[%s4138_s0 + $0x1b0] sm:$0xff]  ;;  %v478_v38 = vld [vmem:[%s4139_s1 + $0x1a0] sm:$0xff]  ;;  %v299_v44 = vld [vmem:[%s4138_s0 + $0x1a8] sm:$0xff] }
  0x33   : > { %v834_v34 = vmax.f32 %v654_v23, 0.0  ;;  %v480_v39 = vld [vmem:[%s4139_s1 + $0x1b0] sm:$0xff]  ;;  %1078 = vst.msk [vmem:[#allocation2 + $0xa8] sm:$0xff] %vm1057_vm0, %v987_v26  ;;  %v836_v41 = vmax.f32 %v656_v29, 0.0  ;;  %v658_v42 = vadd.f32 %v478_v38, %v298_v32  ;;  %v301_v45 = vld [vmem:[%s4138_s0 + $0x1b8] sm:$0xff]  ;;  %v479_v46 = vld [vmem:[%s4139_s1 + $0x1a8] sm:$0xff] }
  0x34   : > { %v989_v40 = vpack.c.bf16 %v833_v28, %v831_v27  ;;  %v660_v43 = vadd.f32 %v480_v39, %v300_v37  ;;  %1079 = vst [vmem:[#allocation2 + $0xb0] sm:$0xff] %v988_v33  ;;  %v835_v47 = vmax.f32 %v655_v35, 0.0  ;;  %v837_v48 = vmax.f32 %v657_v36, 0.0  ;;  %v481_v49 = vld [vmem:[%s4139_s1 + $0x1b8] sm:$0xff]  ;;  %v302_v51 = vld [vmem:[%s4138_s0 + $0x1c0] sm:$0xff]  ;;  %v304_v52 = vld [vmem:[%s4138_s0 + $0x1d0] sm:$0xff] }
  0x35   : > { %v659_v50 = vadd.f32 %v479_v46, %v299_v44  ;;  %v990_v53 = vpack.c.bf16 %v836_v41, %v834_v34  ;;  %v838_v54 = vmax.f32 %v658_v42, 0.0  ;;  %v661_v56 = vadd.f32 %v481_v49, %v301_v45  ;;  %v482_v57 = vld [vmem:[%s4139_s1 + $0x1c0] sm:$0xff]  ;;  %v484_v58 = vld [vmem:[%s4139_s1 + $0x1d0] sm:$0xff]  ;;  %v303_v59 = vld [vmem:[%s4138_s0 + $0x1c8] sm:$0xff] }
  0x36   : > { %1080 = vst.msk [vmem:[#allocation2 + $0xb8] sm:$0xff] %vm1057_vm0, %v989_v40  ;;  %v840_v55 = vmax.f32 %v660_v43, 0.0  ;;  %v991_v60 = vpack.c.bf16 %v837_v48, %v835_v47  ;;  %v662_v62 = vadd.f32 %v482_v57, %v302_v51  ;;  %v664_v63 = vadd.f32 %v484_v58, %v304_v52  ;;  %v305_v0 = vld [vmem:[%s4138_s0 + $0x1d8] sm:$0xff]  ;;  %v483_v1 = vld [vmem:[%s4139_s1 + $0x1c8] sm:$0xff]  ;;  %v306_v7 = vld [vmem:[%s4138_s0 + $0x1e0] sm:$0xff] }
  0x37   : > { %v839_v61 = vmax.f32 %v659_v50, 0.0  ;;  %v485_v2 = vld [vmem:[%s4139_s1 + $0x1d8] sm:$0xff]  ;;  %1081 = vst [vmem:[#allocation2 + $0xc0] sm:$0xff] %v990_v53  ;;  %v841_v4 = vmax.f32 %v661_v56, 0.0  ;;  %v663_v5 = vadd.f32 %v483_v1, %v303_v59  ;;  %v308_v8 = vld [vmem:[%s4138_s0 + $0x1f0] sm:$0xff]  ;;  %v486_v9 = vld [vmem:[%s4139_s1 + $0x1e0] sm:$0xff] }
  0x38   : > { %v992_v3 = vpack.c.bf16 %v840_v55, %v838_v54  ;;  %v665_v6 = vadd.f32 %v485_v2, %v305_v0  ;;  %1082 = vst.msk [vmem:[#allocation2 + $0xc8] sm:$0xff] %vm1057_vm0, %v991_v60  ;;  %v842_v10 = vmax.f32 %v662_v62, 0.0  ;;  %v844_v11 = vmax.f32 %v664_v63, 0.0  ;;  %v488_v12 = vld [vmem:[%s4139_s1 + $0x1f0] sm:$0xff]  ;;  %v307_v14 = vld [vmem:[%s4138_s0 + $0x1e8] sm:$0xff]  ;;  %v309_v15 = vld [vmem:[%s4138_s0 + $0x1f8] sm:$0xff] }
  0x39   : > { %v666_v13 = vadd.f32 %v486_v9, %v306_v7  ;;  %v993_v16 = vpack.c.bf16 %v841_v4, %v839_v61  ;;  %v843_v17 = vmax.f32 %v663_v5, 0.0  ;;  %v668_v19 = vadd.f32 %v488_v12, %v308_v8  ;;  %v487_v20 = vld [vmem:[%s4139_s1 + $0x1e8] sm:$0xff]  ;;  %v489_v21 = vld [vmem:[%s4139_s1 + $0x1f8] sm:$0xff]  ;;  %v310_v22 = vld [vmem:[%s4138_s0 + $0x200] sm:$0xff] }
  0x3a   : > { %1083 = vst [vmem:[#allocation2 + $0xd0] sm:$0xff] %v992_v3  ;;  %v845_v18 = vmax.f32 %v665_v6, 0.0  ;;  %v994_v23 = vpack.c.bf16 %v844_v11, %v842_v10  ;;  %v667_v25 = vadd.f32 %v487_v20, %v307_v14  ;;  %v669_v26 = vadd.f32 %v489_v21, %v309_v15  ;;  %v312_v27 = vld [vmem:[%s4138_s0 + $0x210] sm:$0xff]  ;;  %v490_v28 = vld [vmem:[%s4139_s1 + $0x200] sm:$0xff]  ;;  %v311_v34 = vld [vmem:[%s4138_s0 + $0x208] sm:$0xff] }
  0x3b   : > { %v846_v24 = vmax.f32 %v666_v13, 0.0  ;;  %v492_v29 = vld [vmem:[%s4139_s1 + $0x210] sm:$0xff]  ;;  %1084 = vst.msk [vmem:[#allocation2 + $0xd8] sm:$0xff] %vm1057_vm0, %v993_v16  ;;  %v848_v31 = vmax.f32 %v668_v19, 0.0  ;;  %v670_v32 = vadd.f32 %v490_v28, %v310_v22  ;;  %v313_v35 = vld [vmem:[%s4138_s0 + $0x218] sm:$0xff]  ;;  %v491_v36 = vld [vmem:[%s4139_s1 + $0x208] sm:$0xff] }
  0x3c   : > { %v995_v30 = vpack.c.bf16 %v845_v18, %v843_v17  ;;  %v672_v33 = vadd.f32 %v492_v29, %v312_v27  ;;  %1085 = vst [vmem:[#allocation2 + $0xe0] sm:$0xff] %v994_v23  ;;  %v847_v37 = vmax.f32 %v667_v25, 0.0  ;;  %v849_v38 = vmax.f32 %v669_v26, 0.0  ;;  %v493_v39 = vld [vmem:[%s4139_s1 + $0x218] sm:$0xff]  ;;  %v314_v41 = vld [vmem:[%s4138_s0 + $0x220] sm:$0xff]  ;;  %v316_v42 = vld [vmem:[%s4138_s0 + $0x230] sm:$0xff] }
  0x3d   : > { %v671_v40 = vadd.f32 %v491_v36, %v311_v34  ;;  %v996_v43 = vpack.c.bf16 %v848_v31, %v846_v24  ;;  %v850_v44 = vmax.f32 %v670_v32, 0.0  ;;  %v673_v46 = vadd.f32 %v493_v39, %v313_v35  ;;  %v494_v47 = vld [vmem:[%s4139_s1 + $0x220] sm:$0xff]  ;;  %v496_v48 = vld [vmem:[%s4139_s1 + $0x230] sm:$0xff]  ;;  %v315_v49 = vld [vmem:[%s4138_s0 + $0x228] sm:$0xff] }
  0x3e   : > { %1086 = vst.msk [vmem:[#allocation2 + $0xe8] sm:$0xff] %vm1057_vm0, %v995_v30  ;;  %v852_v45 = vmax.f32 %v672_v33, 0.0  ;;  %v997_v50 = vpack.c.bf16 %v849_v38, %v847_v37  ;;  %v674_v52 = vadd.f32 %v494_v47, %v314_v41  ;;  %v676_v53 = vadd.f32 %v496_v48, %v316_v42  ;;  %v317_v54 = vld [vmem:[%s4138_s0 + $0x238] sm:$0xff]  ;;  %v495_v55 = vld [vmem:[%s4139_s1 + $0x228] sm:$0xff]  ;;  %v318_v61 = vld [vmem:[%s4138_s0 + $0x240] sm:$0xff] }
  0x3f   : > { %v851_v51 = vmax.f32 %v671_v40, 0.0  ;;  %v497_v56 = vld [vmem:[%s4139_s1 + $0x238] sm:$0xff]  ;;  %1087 = vst [vmem:[#allocation2 + $0xf0] sm:$0xff] %v996_v43  ;;  %v853_v58 = vmax.f32 %v673_v46, 0.0  ;;  %v675_v59 = vadd.f32 %v495_v55, %v315_v49  ;;  %v320_v62 = vld [vmem:[%s4138_s0 + $0x250] sm:$0xff]  ;;  %v498_v63 = vld [vmem:[%s4139_s1 + $0x240] sm:$0xff] }
  0x40   : > { %v998_v57 = vpack.c.bf16 %v852_v45, %v850_v44  ;;  %v677_v60 = vadd.f32 %v497_v56, %v317_v54  ;;  %1088 = vst.msk [vmem:[#allocation2 + $0xf8] sm:$0xff] %vm1057_vm0, %v997_v50  ;;  %v854_v0 = vmax.f32 %v674_v52, 0.0  ;;  %v856_v1 = vmax.f32 %v676_v53, 0.0  ;;  %v500_v2 = vld [vmem:[%s4139_s1 + $0x250] sm:$0xff]  ;;  %v319_v4 = vld [vmem:[%s4138_s0 + $0x248] sm:$0xff]  ;;  %v321_v5 = vld [vmem:[%s4138_s0 + $0x258] sm:$0xff] }
  0x41   : > { %v678_v3 = vadd.f32 %v498_v63, %v318_v61  ;;  %v999_v6 = vpack.c.bf16 %v853_v58, %v851_v51  ;;  %v855_v7 = vmax.f32 %v675_v59, 0.0  ;;  %v680_v9 = vadd.f32 %v500_v2, %v320_v62  ;;  %v499_v10 = vld [vmem:[%s4139_s1 + $0x248] sm:$0xff]  ;;  %v501_v11 = vld [vmem:[%s4139_s1 + $0x258] sm:$0xff]  ;;  %v322_v12 = vld [vmem:[%s4138_s0 + $0x260] sm:$0xff] }
  0x42   : > { %1089 = vst [vmem:[#allocation2 + $0x100] sm:$0xff] %v998_v57  ;;  %v857_v8 = vmax.f32 %v677_v60, 0.0  ;;  %v1000_v13 = vpack.c.bf16 %v856_v1, %v854_v0  ;;  %v679_v15 = vadd.f32 %v499_v10, %v319_v4  ;;  %v681_v16 = vadd.f32 %v501_v11, %v321_v5  ;;  %v324_v17 = vld [vmem:[%s4138_s0 + $0x270] sm:$0xff]  ;;  %v502_v18 = vld [vmem:[%s4139_s1 + $0x260] sm:$0xff]  ;;  %v323_v24 = vld [vmem:[%s4138_s0 + $0x268] sm:$0xff] }
  0x43   : > { %v858_v14 = vmax.f32 %v678_v3, 0.0  ;;  %v504_v19 = vld [vmem:[%s4139_s1 + $0x270] sm:$0xff]  ;;  %1090 = vst.msk [vmem:[#allocation2 + $0x108] sm:$0xff] %vm1057_vm0, %v999_v6  ;;  %v860_v21 = vmax.f32 %v680_v9, 0.0  ;;  %v682_v22 = vadd.f32 %v502_v18, %v322_v12  ;;  %v325_v25 = vld [vmem:[%s4138_s0 + $0x278] sm:$0xff]  ;;  %v503_v26 = vld [vmem:[%s4139_s1 + $0x268] sm:$0xff] }
  0x44   : > { %v1001_v20 = vpack.c.bf16 %v857_v8, %v855_v7  ;;  %v684_v23 = vadd.f32 %v504_v19, %v324_v17  ;;  %1091 = vst [vmem:[#allocation2 + $0x110] sm:$0xff] %v1000_v13  ;;  %v859_v27 = vmax.f32 %v679_v15, 0.0  ;;  %v861_v28 = vmax.f32 %v681_v16, 0.0  ;;  %v505_v29 = vld [vmem:[%s4139_s1 + $0x278] sm:$0xff]  ;;  %v326_v31 = vld [vmem:[%s4138_s0 + $0x280] sm:$0xff]  ;;  %v328_v32 = vld [vmem:[%s4138_s0 + $0x290] sm:$0xff] }
  0x45   : > { %v683_v30 = vadd.f32 %v503_v26, %v323_v24  ;;  %v1002_v33 = vpack.c.bf16 %v860_v21, %v858_v14  ;;  %v862_v34 = vmax.f32 %v682_v22, 0.0  ;;  %v685_v36 = vadd.f32 %v505_v29, %v325_v25  ;;  %v506_v37 = vld [vmem:[%s4139_s1 + $0x280] sm:$0xff]  ;;  %v508_v38 = vld [vmem:[%s4139_s1 + $0x290] sm:$0xff]  ;;  %v327_v39 = vld [vmem:[%s4138_s0 + $0x288] sm:$0xff] }
  0x46   : > { %1092 = vst.msk [vmem:[#allocation2 + $0x118] sm:$0xff] %vm1057_vm0, %v1001_v20  ;;  %v864_v35 = vmax.f32 %v684_v23, 0.0  ;;  %v1003_v40 = vpack.c.bf16 %v861_v28, %v859_v27  ;;  %v686_v42 = vadd.f32 %v506_v37, %v326_v31  ;;  %v688_v43 = vadd.f32 %v508_v38, %v328_v32  ;;  %v329_v44 = vld [vmem:[%s4138_s0 + $0x298] sm:$0xff]  ;;  %v507_v45 = vld [vmem:[%s4139_s1 + $0x288] sm:$0xff]  ;;  %v330_v51 = vld [vmem:[%s4138_s0 + $0x2a0] sm:$0xff] }
  0x47   : > { %v863_v41 = vmax.f32 %v683_v30, 0.0  ;;  %v509_v46 = vld [vmem:[%s4139_s1 + $0x298] sm:$0xff]  ;;  %1093 = vst [vmem:[#allocation2 + $0x120] sm:$0xff] %v1002_v33  ;;  %v865_v48 = vmax.f32 %v685_v36, 0.0  ;;  %v687_v49 = vadd.f32 %v507_v45, %v327_v39  ;;  %v332_v52 = vld [vmem:[%s4138_s0 + $0x2b0] sm:$0xff]  ;;  %v510_v53 = vld [vmem:[%s4139_s1 + $0x2a0] sm:$0xff] }
  0x48   : > { %v1004_v47 = vpack.c.bf16 %v864_v35, %v862_v34  ;;  %v689_v50 = vadd.f32 %v509_v46, %v329_v44  ;;  %1094 = vst.msk [vmem:[#allocation2 + $0x128] sm:$0xff] %vm1057_vm0, %v1003_v40  ;;  %v866_v54 = vmax.f32 %v686_v42, 0.0  ;;  %v868_v55 = vmax.f32 %v688_v43, 0.0  ;;  %v512_v56 = vld [vmem:[%s4139_s1 + $0x2b0] sm:$0xff]  ;;  %v331_v58 = vld [vmem:[%s4138_s0 + $0x2a8] sm:$0xff]  ;;  %v333_v59 = vld [vmem:[%s4138_s0 + $0x2b8] sm:$0xff] }
  0x49   : > { %v690_v57 = vadd.f32 %v510_v53, %v330_v51  ;;  %v1005_v60 = vpack.c.bf16 %v865_v48, %v863_v41  ;;  %v867_v61 = vmax.f32 %v687_v49, 0.0  ;;  %v692_v63 = vadd.f32 %v512_v56, %v332_v52  ;;  %v511_v0 = vld [vmem:[%s4139_s1 + $0x2a8] sm:$0xff]  ;;  %v513_v1 = vld [vmem:[%s4139_s1 + $0x2b8] sm:$0xff]  ;;  %v334_v2 = vld [vmem:[%s4138_s0 + $0x2c0] sm:$0xff] }
  0x4a   : > { %1095 = vst [vmem:[#allocation2 + $0x130] sm:$0xff] %v1004_v47  ;;  %v869_v62 = vmax.f32 %v689_v50, 0.0  ;;  %v1006_v3 = vpack.c.bf16 %v868_v55, %v866_v54  ;;  %v691_v5 = vadd.f32 %v511_v0, %v331_v58  ;;  %v693_v6 = vadd.f32 %v513_v1, %v333_v59  ;;  %v336_v7 = vld [vmem:[%s4138_s0 + $0x2d0] sm:$0xff]  ;;  %v514_v8 = vld [vmem:[%s4139_s1 + $0x2c0] sm:$0xff]  ;;  %v335_v14 = vld [vmem:[%s4138_s0 + $0x2c8] sm:$0xff] }
  0x4b   : > { %v870_v4 = vmax.f32 %v690_v57, 0.0  ;;  %v516_v9 = vld [vmem:[%s4139_s1 + $0x2d0] sm:$0xff]  ;;  %1096 = vst.msk [vmem:[#allocation2 + $0x138] sm:$0xff] %vm1057_vm0, %v1005_v60  ;;  %v872_v11 = vmax.f32 %v692_v63, 0.0  ;;  %v694_v12 = vadd.f32 %v514_v8, %v334_v2  ;;  %v337_v15 = vld [vmem:[%s4138_s0 + $0x2d8] sm:$0xff]  ;;  %v515_v16 = vld [vmem:[%s4139_s1 + $0x2c8] sm:$0xff] }
  0x4c   : > { %v1007_v10 = vpack.c.bf16 %v869_v62, %v867_v61  ;;  %v696_v13 = vadd.f32 %v516_v9, %v336_v7  ;;  %1097 = vst [vmem:[#allocation2 + $0x140] sm:$0xff] %v1006_v3  ;;  %v871_v17 = vmax.f32 %v691_v5, 0.0  ;;  %v873_v18 = vmax.f32 %v693_v6, 0.0  ;;  %v517_v19 = vld [vmem:[%s4139_s1 + $0x2d8] sm:$0xff]  ;;  %v338_v21 = vld [vmem:[%s4138_s0 + $0x2e0] sm:$0xff]  ;;  %v340_v22 = vld [vmem:[%s4138_s0 + $0x2f0] sm:$0xff] }
  0x4d   : > { %v695_v20 = vadd.f32 %v515_v16, %v335_v14  ;;  %v1008_v23 = vpack.c.bf16 %v872_v11, %v870_v4  ;;  %v874_v24 = vmax.f32 %v694_v12, 0.0  ;;  %v697_v26 = vadd.f32 %v517_v19, %v337_v15  ;;  %v518_v27 = vld [vmem:[%s4139_s1 + $0x2e0] sm:$0xff]  ;;  %v520_v28 = vld [vmem:[%s4139_s1 + $0x2f0] sm:$0xff]  ;;  %v339_v29 = vld [vmem:[%s4138_s0 + $0x2e8] sm:$0xff] }
  0x4e   : > { %1098 = vst.msk [vmem:[#allocation2 + $0x148] sm:$0xff] %vm1057_vm0, %v1007_v10  ;;  %v876_v25 = vmax.f32 %v696_v13, 0.0  ;;  %v1009_v30 = vpack.c.bf16 %v873_v18, %v871_v17  ;;  %v698_v32 = vadd.f32 %v518_v27, %v338_v21  ;;  %v700_v33 = vadd.f32 %v520_v28, %v340_v22  ;;  %v341_v34 = vld [vmem:[%s4138_s0 + $0x2f8] sm:$0xff]  ;;  %v519_v35 = vld [vmem:[%s4139_s1 + $0x2e8] sm:$0xff]  ;;  %v342_v41 = vld [vmem:[%s4138_s0 + $0x300] sm:$0xff] }
  0x4f   : > { %v875_v31 = vmax.f32 %v695_v20, 0.0  ;;  %v521_v36 = vld [vmem:[%s4139_s1 + $0x2f8] sm:$0xff]  ;;  %1099 = vst [vmem:[#allocation2 + $0x150] sm:$0xff] %v1008_v23  ;;  %v877_v38 = vmax.f32 %v697_v26, 0.0  ;;  %v699_v39 = vadd.f32 %v519_v35, %v339_v29  ;;  %v344_v42 = vld [vmem:[%s4138_s0 + $0x310] sm:$0xff]  ;;  %v522_v43 = vld [vmem:[%s4139_s1 + $0x300] sm:$0xff] }
  0x50   : > { %v1010_v37 = vpack.c.bf16 %v876_v25, %v874_v24  ;;  %v701_v40 = vadd.f32 %v521_v36, %v341_v34  ;;  %1100 = vst.msk [vmem:[#allocation2 + $0x158] sm:$0xff] %vm1057_vm0, %v1009_v30  ;;  %v878_v44 = vmax.f32 %v698_v32, 0.0  ;;  %v880_v45 = vmax.f32 %v700_v33, 0.0  ;;  %v524_v46 = vld [vmem:[%s4139_s1 + $0x310] sm:$0xff]  ;;  %v343_v48 = vld [vmem:[%s4138_s0 + $0x308] sm:$0xff]  ;;  %v345_v49 = vld [vmem:[%s4138_s0 + $0x318] sm:$0xff] }
  0x51   : > { %v702_v47 = vadd.f32 %v522_v43, %v342_v41  ;;  %v1011_v50 = vpack.c.bf16 %v877_v38, %v875_v31  ;;  %v879_v51 = vmax.f32 %v699_v39, 0.0  ;;  %v704_v53 = vadd.f32 %v524_v46, %v344_v42  ;;  %v523_v54 = vld [vmem:[%s4139_s1 + $0x308] sm:$0xff]  ;;  %v525_v55 = vld [vmem:[%s4139_s1 + $0x318] sm:$0xff]  ;;  %v346_v56 = vld [vmem:[%s4138_s0 + $0x320] sm:$0xff] }
  0x52   : > { %1101 = vst [vmem:[#allocation2 + $0x160] sm:$0xff] %v1010_v37  ;;  %v881_v52 = vmax.f32 %v701_v40, 0.0  ;;  %v1012_v57 = vpack.c.bf16 %v880_v45, %v878_v44  ;;  %v703_v59 = vadd.f32 %v523_v54, %v343_v48  ;;  %v705_v60 = vadd.f32 %v525_v55, %v345_v49  ;;  %v348_v61 = vld [vmem:[%s4138_s0 + $0x330] sm:$0xff]  ;;  %v526_v62 = vld [vmem:[%s4139_s1 + $0x320] sm:$0xff]  ;;  %v347_v4 = vld [vmem:[%s4138_s0 + $0x328] sm:$0xff] }
  0x53   : > { %v882_v58 = vmax.f32 %v702_v47, 0.0  ;;  %v528_v63 = vld [vmem:[%s4139_s1 + $0x330] sm:$0xff]  ;;  %1102 = vst.msk [vmem:[#allocation2 + $0x168] sm:$0xff] %vm1057_vm0, %v1011_v50  ;;  %v884_v1 = vmax.f32 %v704_v53, 0.0  ;;  %v706_v2 = vadd.f32 %v526_v62, %v346_v56  ;;  %v349_v5 = vld [vmem:[%s4138_s0 + $0x338] sm:$0xff]  ;;  %v527_v6 = vld [vmem:[%s4139_s1 + $0x328] sm:$0xff] }
  0x54   : > { %v1013_v0 = vpack.c.bf16 %v881_v52, %v879_v51  ;;  %v708_v3 = vadd.f32 %v528_v63, %v348_v61  ;;  %1103 = vst [vmem:[#allocation2 + $0x170] sm:$0xff] %v1012_v57  ;;  %v883_v7 = vmax.f32 %v703_v59, 0.0  ;;  %v885_v8 = vmax.f32 %v705_v60, 0.0  ;;  %v529_v9 = vld [vmem:[%s4139_s1 + $0x338] sm:$0xff]  ;;  %v350_v11 = vld [vmem:[%s4138_s0 + $0x340] sm:$0xff]  ;;  %v352_v12 = vld [vmem:[%s4138_s0 + $0x350] sm:$0xff] }
  0x55   : > { %v707_v10 = vadd.f32 %v527_v6, %v347_v4  ;;  %v1014_v13 = vpack.c.bf16 %v884_v1, %v882_v58  ;;  %v886_v14 = vmax.f32 %v706_v2, 0.0  ;;  %v709_v16 = vadd.f32 %v529_v9, %v349_v5  ;;  %v530_v17 = vld [vmem:[%s4139_s1 + $0x340] sm:$0xff]  ;;  %v532_v18 = vld [vmem:[%s4139_s1 + $0x350] sm:$0xff]  ;;  %v351_v19 = vld [vmem:[%s4138_s0 + $0x348] sm:$0xff] }
  0x56   : > { %1104 = vst.msk [vmem:[#allocation2 + $0x178] sm:$0xff] %vm1057_vm0, %v1013_v0  ;;  %v888_v15 = vmax.f32 %v708_v3, 0.0  ;;  %v1015_v20 = vpack.c.bf16 %v885_v8, %v883_v7  ;;  %v710_v22 = vadd.f32 %v530_v17, %v350_v11  ;;  %v712_v23 = vadd.f32 %v532_v18, %v352_v12  ;;  %v353_v24 = vld [vmem:[%s4138_s0 + $0x358] sm:$0xff]  ;;  %v531_v25 = vld [vmem:[%s4139_s1 + $0x348] sm:$0xff]  ;;  %v354_v31 = vld [vmem:[%s4138_s0 + $0x360] sm:$0xff] }
  0x57   : > { %v887_v21 = vmax.f32 %v707_v10, 0.0  ;;  %v533_v26 = vld [vmem:[%s4139_s1 + $0x358] sm:$0xff]  ;;  %1105 = vst [vmem:[#allocation2 + $0x180] sm:$0xff] %v1014_v13  ;;  %v889_v28 = vmax.f32 %v709_v16, 0.0  ;;  %v711_v29 = vadd.f32 %v531_v25, %v351_v19  ;;  %v356_v32 = vld [vmem:[%s4138_s0 + $0x370] sm:$0xff]  ;;  %v534_v33 = vld [vmem:[%s4139_s1 + $0x360] sm:$0xff] }
  0x58   : > { %v1016_v27 = vpack.c.bf16 %v888_v15, %v886_v14  ;;  %v713_v30 = vadd.f32 %v533_v26, %v353_v24  ;;  %1106 = vst.msk [vmem:[#allocation2 + $0x188] sm:$0xff] %vm1057_vm0, %v1015_v20  ;;  %v890_v34 = vmax.f32 %v710_v22, 0.0  ;;  %v892_v35 = vmax.f32 %v712_v23, 0.0  ;;  %v536_v36 = vld [vmem:[%s4139_s1 + $0x370] sm:$0xff]  ;;  %v355_v38 = vld [vmem:[%s4138_s0 + $0x368] sm:$0xff]  ;;  %v357_v39 = vld [vmem:[%s4138_s0 + $0x378] sm:$0xff] }
  0x59   : > { %v714_v37 = vadd.f32 %v534_v33, %v354_v31  ;;  %v1017_v40 = vpack.c.bf16 %v889_v28, %v887_v21  ;;  %v891_v41 = vmax.f32 %v711_v29, 0.0  ;;  %v716_v43 = vadd.f32 %v536_v36, %v356_v32  ;;  %v535_v44 = vld [vmem:[%s4139_s1 + $0x368] sm:$0xff]  ;;  %v537_v45 = vld [vmem:[%s4139_s1 + $0x378] sm:$0xff]  ;;  %v358_v46 = vld [vmem:[%s4138_s0 + $0x380] sm:$0xff] }
  0x5a   : > { %1107 = vst [vmem:[#allocation2 + $0x190] sm:$0xff] %v1016_v27  ;;  %v893_v42 = vmax.f32 %v713_v30, 0.0  ;;  %v1018_v47 = vpack.c.bf16 %v892_v35, %v890_v34  ;;  %v715_v49 = vadd.f32 %v535_v44, %v355_v38  ;;  %v717_v50 = vadd.f32 %v537_v45, %v357_v39  ;;  %v360_v51 = vld [vmem:[%s4138_s0 + $0x390] sm:$0xff]  ;;  %v538_v52 = vld [vmem:[%s4139_s1 + $0x380] sm:$0xff]  ;;  %v359_v58 = vld [vmem:[%s4138_s0 + $0x388] sm:$0xff] }
  0x5b   : > { %v894_v48 = vmax.f32 %v714_v37, 0.0  ;;  %v540_v53 = vld [vmem:[%s4139_s1 + $0x390] sm:$0xff]  ;;  %1108 = vst.msk [vmem:[#allocation2 + $0x198] sm:$0xff] %vm1057_vm0, %v1017_v40  ;;  %v896_v55 = vmax.f32 %v716_v43, 0.0  ;;  %v718_v56 = vadd.f32 %v538_v52, %v358_v46  ;;  %v361_v59 = vld [vmem:[%s4138_s0 + $0x398] sm:$0xff]  ;;  %v539_v60 = vld [vmem:[%s4139_s1 + $0x388] sm:$0xff] }
  0x5c   : > { %v1019_v54 = vpack.c.bf16 %v893_v42, %v891_v41  ;;  %v720_v57 = vadd.f32 %v540_v53, %v360_v51  ;;  %1109 = vst [vmem:[#allocation2 + $0x1a0] sm:$0xff] %v1018_v47  ;;  %v895_v61 = vmax.f32 %v715_v49, 0.0  ;;  %v897_v62 = vmax.f32 %v717_v50, 0.0  ;;  %v541_v63 = vld [vmem:[%s4139_s1 + $0x398] sm:$0xff]  ;;  %v362_v1 = vld [vmem:[%s4138_s0 + $0x3a0] sm:$0xff]  ;;  %v364_v2 = vld [vmem:[%s4138_s0 + $0x3b0] sm:$0xff] }
  0x5d   : > { %v719_v0 = vadd.f32 %v539_v60, %v359_v58  ;;  %v1020_v3 = vpack.c.bf16 %v896_v55, %v894_v48  ;;  %v898_v4 = vmax.f32 %v718_v56, 0.0  ;;  %v721_v6 = vadd.f32 %v541_v63, %v361_v59  ;;  %v542_v7 = vld [vmem:[%s4139_s1 + $0x3a0] sm:$0xff]  ;;  %v544_v8 = vld [vmem:[%s4139_s1 + $0x3b0] sm:$0xff]  ;;  %v363_v9 = vld [vmem:[%s4138_s0 + $0x3a8] sm:$0xff] }
  0x5e   : > { %1110 = vst.msk [vmem:[#allocation2 + $0x1a8] sm:$0xff] %vm1057_vm0, %v1019_v54  ;;  %v900_v5 = vmax.f32 %v720_v57, 0.0  ;;  %v1021_v10 = vpack.c.bf16 %v897_v62, %v895_v61  ;;  %v722_v12 = vadd.f32 %v542_v7, %v362_v1  ;;  %v724_v13 = vadd.f32 %v544_v8, %v364_v2  ;;  %v365_v14 = vld [vmem:[%s4138_s0 + $0x3b8] sm:$0xff]  ;;  %v543_v15 = vld [vmem:[%s4139_s1 + $0x3a8] sm:$0xff]  ;;  %v366_v21 = vld [vmem:[%s4138_s0 + $0x3c0] sm:$0xff] }
  0x5f   : > { %v899_v11 = vmax.f32 %v719_v0, 0.0  ;;  %v545_v16 = vld [vmem:[%s4139_s1 + $0x3b8] sm:$0xff]  ;;  %1111 = vst [vmem:[#allocation2 + $0x1b0] sm:$0xff] %v1020_v3  ;;  %v901_v18 = vmax.f32 %v721_v6, 0.0  ;;  %v723_v19 = vadd.f32 %v543_v15, %v363_v9  ;;  %v368_v22 = vld [vmem:[%s4138_s0 + $0x3d0] sm:$0xff]  ;;  %v546_v23 = vld [vmem:[%s4139_s1 + $0x3c0] sm:$0xff] }
  0x60   : > { %v1022_v17 = vpack.c.bf16 %v900_v5, %v898_v4  ;;  %v725_v20 = vadd.f32 %v545_v16, %v365_v14  ;;  %1112 = vst.msk [vmem:[#allocation2 + $0x1b8] sm:$0xff] %vm1057_vm0, %v1021_v10  ;;  %v902_v24 = vmax.f32 %v722_v12, 0.0  ;;  %v904_v25 = vmax.f32 %v724_v13, 0.0  ;;  %v548_v26 = vld [vmem:[%s4139_s1 + $0x3d0] sm:$0xff]  ;;  %v367_v28 = vld [vmem:[%s4138_s0 + $0x3c8] sm:$0xff]  ;;  %v369_v29 = vld [vmem:[%s4138_s0 + $0x3d8] sm:$0xff] }
  0x61   : > { %v726_v27 = vadd.f32 %v546_v23, %v366_v21  ;;  %v1023_v30 = vpack.c.bf16 %v901_v18, %v899_v11  ;;  %v903_v31 = vmax.f32 %v723_v19, 0.0  ;;  %v728_v33 = vadd.f32 %v548_v26, %v368_v22  ;;  %v547_v34 = vld [vmem:[%s4139_s1 + $0x3c8] sm:$0xff]  ;;  %v549_v35 = vld [vmem:[%s4139_s1 + $0x3d8] sm:$0xff]  ;;  %v370_v36 = vld [vmem:[%s4138_s0 + $0x3e0] sm:$0xff] }
  0x62   : > { %1113 = vst [vmem:[#allocation2 + $0x1c0] sm:$0xff] %v1022_v17  ;;  %v905_v32 = vmax.f32 %v725_v20, 0.0  ;;  %v1024_v37 = vpack.c.bf16 %v904_v25, %v902_v24  ;;  %v727_v39 = vadd.f32 %v547_v34, %v367_v28  ;;  %v729_v40 = vadd.f32 %v549_v35, %v369_v29  ;;  %v372_v41 = vld [vmem:[%s4138_s0 + $0x3f0] sm:$0xff]  ;;  %v550_v42 = vld [vmem:[%s4139_s1 + $0x3e0] sm:$0xff]  ;;  %v371_v48 = vld [vmem:[%s4138_s0 + $0x3e8] sm:$0xff] }
  0x63   : > { %v906_v38 = vmax.f32 %v726_v27, 0.0  ;;  %v552_v43 = vld [vmem:[%s4139_s1 + $0x3f0] sm:$0xff]  ;;  %1114 = vst.msk [vmem:[#allocation2 + $0x1c8] sm:$0xff] %vm1057_vm0, %v1023_v30  ;;  %v908_v45 = vmax.f32 %v728_v33, 0.0  ;;  %v730_v46 = vadd.f32 %v550_v42, %v370_v36  ;;  %v373_v49 = vld [vmem:[%s4138_s0 + $0x3f8] sm:$0xff]  ;;  %v551_v50 = vld [vmem:[%s4139_s1 + $0x3e8] sm:$0xff] }
  0x64   : > { %v1025_v44 = vpack.c.bf16 %v905_v32, %v903_v31  ;;  %v732_v47 = vadd.f32 %v552_v43, %v372_v41  ;;  %1115 = vst [vmem:[#allocation2 + $0x1d0] sm:$0xff] %v1024_v37  ;;  %v907_v51 = vmax.f32 %v727_v39, 0.0  ;;  %v909_v52 = vmax.f32 %v729_v40, 0.0  ;;  %v553_v53 = vld [vmem:[%s4139_s1 + $0x3f8] sm:$0xff]  ;;  %v374_v55 = vld [vmem:[%s4138_s0 + $0x400] sm:$0xff]  ;;  %v376_v56 = vld [vmem:[%s4138_s0 + $0x410] sm:$0xff] }
  0x65   : > { %v731_v54 = vadd.f32 %v551_v50, %v371_v48  ;;  %v1026_v57 = vpack.c.bf16 %v908_v45, %v906_v38  ;;  %v910_v58 = vmax.f32 %v730_v46, 0.0  ;;  %v733_v60 = vadd.f32 %v553_v53, %v373_v49  ;;  %v554_v61 = vld [vmem:[%s4139_s1 + $0x400] sm:$0xff]  ;;  %v556_v62 = vld [vmem:[%s4139_s1 + $0x410] sm:$0xff]  ;;  %v375_v63 = vld [vmem:[%s4138_s0 + $0x408] sm:$0xff] }
  0x66   : > { %1116 = vst.msk [vmem:[#allocation2 + $0x1d8] sm:$0xff] %vm1057_vm0, %v1025_v44  ;;  %v912_v59 = vmax.f32 %v732_v47, 0.0  ;;  %v1027_v0 = vpack.c.bf16 %v909_v52, %v907_v51  ;;  %v734_v2 = vadd.f32 %v554_v61, %v374_v55  ;;  %v736_v3 = vadd.f32 %v556_v62, %v376_v56  ;;  %v377_v4 = vld [vmem:[%s4138_s0 + $0x418] sm:$0xff]  ;;  %v555_v5 = vld [vmem:[%s4139_s1 + $0x408] sm:$0xff]  ;;  %v378_v11 = vld [vmem:[%s4138_s0 + $0x420] sm:$0xff] }
  0x67   : > { %v911_v1 = vmax.f32 %v731_v54, 0.0  ;;  %v557_v6 = vld [vmem:[%s4139_s1 + $0x418] sm:$0xff]  ;;  %1117 = vst [vmem:[#allocation2 + $0x1e0] sm:$0xff] %v1026_v57  ;;  %v913_v8 = vmax.f32 %v733_v60, 0.0  ;;  %v735_v9 = vadd.f32 %v555_v5, %v375_v63  ;;  %v380_v12 = vld [vmem:[%s4138_s0 + $0x430] sm:$0xff]  ;;  %v558_v13 = vld [vmem:[%s4139_s1 + $0x420] sm:$0xff] }
  0x68   : > { %v1028_v7 = vpack.c.bf16 %v912_v59, %v910_v58  ;;  %v737_v10 = vadd.f32 %v557_v6, %v377_v4  ;;  %1118 = vst.msk [vmem:[#allocation2 + $0x1e8] sm:$0xff] %vm1057_vm0, %v1027_v0  ;;  %v914_v14 = vmax.f32 %v734_v2, 0.0  ;;  %v916_v15 = vmax.f32 %v736_v3, 0.0  ;;  %v560_v16 = vld [vmem:[%s4139_s1 + $0x430] sm:$0xff]  ;;  %v379_v18 = vld [vmem:[%s4138_s0 + $0x428] sm:$0xff]  ;;  %v381_v19 = vld [vmem:[%s4138_s0 + $0x438] sm:$0xff] }
  0x69   : > { %v738_v17 = vadd.f32 %v558_v13, %v378_v11  ;;  %v1029_v20 = vpack.c.bf16 %v913_v8, %v911_v1  ;;  %v915_v21 = vmax.f32 %v735_v9, 0.0  ;;  %v740_v23 = vadd.f32 %v560_v16, %v380_v12  ;;  %v559_v24 = vld [vmem:[%s4139_s1 + $0x428] sm:$0xff]  ;;  %v561_v25 = vld [vmem:[%s4139_s1 + $0x438] sm:$0xff]  ;;  %v382_v26 = vld [vmem:[%s4138_s0 + $0x440] sm:$0xff] }
  0x6a   : > { %1119 = vst [vmem:[#allocation2 + $0x1f0] sm:$0xff] %v1028_v7  ;;  %v917_v22 = vmax.f32 %v737_v10, 0.0  ;;  %v1030_v27 = vpack.c.bf16 %v916_v15, %v914_v14  ;;  %v739_v29 = vadd.f32 %v559_v24, %v379_v18  ;;  %v741_v30 = vadd.f32 %v561_v25, %v381_v19  ;;  %v384_v31 = vld [vmem:[%s4138_s0 + $0x450] sm:$0xff]  ;;  %v562_v32 = vld [vmem:[%s4139_s1 + $0x440] sm:$0xff]  ;;  %v383_v38 = vld [vmem:[%s4138_s0 + $0x448] sm:$0xff] }
  0x6b   : > { %v918_v28 = vmax.f32 %v738_v17, 0.0  ;;  %v564_v33 = vld [vmem:[%s4139_s1 + $0x450] sm:$0xff]  ;;  %1120 = vst.msk [vmem:[#allocation2 + $0x1f8] sm:$0xff] %vm1057_vm0, %v1029_v20  ;;  %v920_v35 = vmax.f32 %v740_v23, 0.0  ;;  %v742_v36 = vadd.f32 %v562_v32, %v382_v26  ;;  %v385_v39 = vld [vmem:[%s4138_s0 + $0x458] sm:$0xff]  ;;  %v563_v40 = vld [vmem:[%s4139_s1 + $0x448] sm:$0xff] }
  0x6c   : > { %v1031_v34 = vpack.c.bf16 %v917_v22, %v915_v21  ;;  %v744_v37 = vadd.f32 %v564_v33, %v384_v31  ;;  %1121 = vst [vmem:[#allocation2 + $0x200] sm:$0xff] %v1030_v27  ;;  %v919_v41 = vmax.f32 %v739_v29, 0.0  ;;  %v921_v42 = vmax.f32 %v741_v30, 0.0  ;;  %v565_v43 = vld [vmem:[%s4139_s1 + $0x458] sm:$0xff]  ;;  %v386_v45 = vld [vmem:[%s4138_s0 + $0x460] sm:$0xff]  ;;  %v388_v46 = vld [vmem:[%s4138_s0 + $0x470] sm:$0xff] }
  0x6d   : > { %v743_v44 = vadd.f32 %v563_v40, %v383_v38  ;;  %v1032_v47 = vpack.c.bf16 %v920_v35, %v918_v28  ;;  %v922_v48 = vmax.f32 %v742_v36, 0.0  ;;  %v745_v50 = vadd.f32 %v565_v43, %v385_v39  ;;  %v566_v51 = vld [vmem:[%s4139_s1 + $0x460] sm:$0xff]  ;;  %v568_v52 = vld [vmem:[%s4139_s1 + $0x470] sm:$0xff]  ;;  %v387_v53 = vld [vmem:[%s4138_s0 + $0x468] sm:$0xff] }
  0x6e   : > { %1122 = vst.msk [vmem:[#allocation2 + $0x208] sm:$0xff] %vm1057_vm0, %v1031_v34  ;;  %v924_v49 = vmax.f32 %v744_v37, 0.0  ;;  %v1033_v54 = vpack.c.bf16 %v921_v42, %v919_v41  ;;  %v746_v56 = vadd.f32 %v566_v51, %v386_v45  ;;  %v748_v57 = vadd.f32 %v568_v52, %v388_v46  ;;  %v389_v58 = vld [vmem:[%s4138_s0 + $0x478] sm:$0xff]  ;;  %v567_v59 = vld [vmem:[%s4139_s1 + $0x468] sm:$0xff]  ;;  %v390_v1 = vld [vmem:[%s4138_s0 + $0x480] sm:$0xff] }
  0x6f   : > { %v923_v55 = vmax.f32 %v743_v44, 0.0  ;;  %v569_v60 = vld [vmem:[%s4139_s1 + $0x478] sm:$0xff]  ;;  %1123 = vst [vmem:[#allocation2 + $0x210] sm:$0xff] %v1032_v47  ;;  %v925_v62 = vmax.f32 %v745_v50, 0.0  ;;  %v747_v63 = vadd.f32 %v567_v59, %v387_v53  ;;  %v392_v2 = vld [vmem:[%s4138_s0 + $0x490] sm:$0xff]  ;;  %v570_v3 = vld [vmem:[%s4139_s1 + $0x480] sm:$0xff] }
  0x70   : > { %v1034_v61 = vpack.c.bf16 %v924_v49, %v922_v48  ;;  %v749_v0 = vadd.f32 %v569_v60, %v389_v58  ;;  %1124 = vst.msk [vmem:[#allocation2 + $0x218] sm:$0xff] %vm1057_vm0, %v1033_v54  ;;  %v926_v4 = vmax.f32 %v746_v56, 0.0  ;;  %v928_v5 = vmax.f32 %v748_v57, 0.0  ;;  %v572_v6 = vld [vmem:[%s4139_s1 + $0x490] sm:$0xff]  ;;  %v391_v8 = vld [vmem:[%s4138_s0 + $0x488] sm:$0xff]  ;;  %v393_v9 = vld [vmem:[%s4138_s0 + $0x498] sm:$0xff] }
  0x71   : > { %v750_v7 = vadd.f32 %v570_v3, %v390_v1  ;;  %v1035_v10 = vpack.c.bf16 %v925_v62, %v923_v55  ;;  %v927_v11 = vmax.f32 %v747_v63, 0.0  ;;  %v752_v13 = vadd.f32 %v572_v6, %v392_v2  ;;  %v571_v14 = vld [vmem:[%s4139_s1 + $0x488] sm:$0xff]  ;;  %v573_v15 = vld [vmem:[%s4139_s1 + $0x498] sm:$0xff]  ;;  %v394_v16 = vld [vmem:[%s4138_s0 + $0x4a0] sm:$0xff] }
  0x72   : > { %1125 = vst [vmem:[#allocation2 + $0x220] sm:$0xff] %v1034_v61  ;;  %v929_v12 = vmax.f32 %v749_v0, 0.0  ;;  %v1036_v17 = vpack.c.bf16 %v928_v5, %v926_v4  ;;  %v751_v19 = vadd.f32 %v571_v14, %v391_v8  ;;  %v753_v20 = vadd.f32 %v573_v15, %v393_v9  ;;  %v396_v21 = vld [vmem:[%s4138_s0 + $0x4b0] sm:$0xff]  ;;  %v574_v22 = vld [vmem:[%s4139_s1 + $0x4a0] sm:$0xff]  ;;  %v395_v28 = vld [vmem:[%s4138_s0 + $0x4a8] sm:$0xff] }
  0x73   : > { %v930_v18 = vmax.f32 %v750_v7, 0.0  ;;  %v576_v23 = vld [vmem:[%s4139_s1 + $0x4b0] sm:$0xff]  ;;  %1126 = vst.msk [vmem:[#allocation2 + $0x228] sm:$0xff] %vm1057_vm0, %v1035_v10  ;;  %v932_v25 = vmax.f32 %v752_v13, 0.0  ;;  %v754_v26 = vadd.f32 %v574_v22, %v394_v16  ;;  %v397_v29 = vld [vmem:[%s4138_s0 + $0x4b8] sm:$0xff]  ;;  %v575_v30 = vld [vmem:[%s4139_s1 + $0x4a8] sm:$0xff] }
  0x74   : > { %v1037_v24 = vpack.c.bf16 %v929_v12, %v927_v11  ;;  %v756_v27 = vadd.f32 %v576_v23, %v396_v21  ;;  %1127 = vst [vmem:[#allocation2 + $0x230] sm:$0xff] %v1036_v17  ;;  %v931_v31 = vmax.f32 %v751_v19, 0.0  ;;  %v933_v32 = vmax.f32 %v753_v20, 0.0  ;;  %v577_v33 = vld [vmem:[%s4139_s1 + $0x4b8] sm:$0xff]  ;;  %v398_v35 = vld [vmem:[%s4138_s0 + $0x4c0] sm:$0xff]  ;;  %v400_v36 = vld [vmem:[%s4138_s0 + $0x4d0] sm:$0xff] }
  0x75   : > { %v755_v34 = vadd.f32 %v575_v30, %v395_v28  ;;  %v1038_v37 = vpack.c.bf16 %v932_v25, %v930_v18  ;;  %v934_v38 = vmax.f32 %v754_v26, 0.0  ;;  %v757_v40 = vadd.f32 %v577_v33, %v397_v29  ;;  %v578_v41 = vld [vmem:[%s4139_s1 + $0x4c0] sm:$0xff]  ;;  %v580_v42 = vld [vmem:[%s4139_s1 + $0x4d0] sm:$0xff]  ;;  %v399_v43 = vld [vmem:[%s4138_s0 + $0x4c8] sm:$0xff] }
  0x76   : > { %1128 = vst.msk [vmem:[#allocation2 + $0x238] sm:$0xff] %vm1057_vm0, %v1037_v24  ;;  %v936_v39 = vmax.f32 %v756_v27, 0.0  ;;  %v1039_v44 = vpack.c.bf16 %v933_v32, %v931_v31  ;;  %v758_v46 = vadd.f32 %v578_v41, %v398_v35  ;;  %v760_v47 = vadd.f32 %v580_v42, %v400_v36  ;;  %v401_v48 = vld [vmem:[%s4138_s0 + $0x4d8] sm:$0xff]  ;;  %v579_v49 = vld [vmem:[%s4139_s1 + $0x4c8] sm:$0xff]  ;;  %v402_v55 = vld [vmem:[%s4138_s0 + $0x4e0] sm:$0xff] }
  0x77   : > { %v935_v45 = vmax.f32 %v755_v34, 0.0  ;;  %v581_v50 = vld [vmem:[%s4139_s1 + $0x4d8] sm:$0xff]  ;;  %1129 = vst [vmem:[#allocation2 + $0x240] sm:$0xff] %v1038_v37  ;;  %v937_v52 = vmax.f32 %v757_v40, 0.0  ;;  %v759_v53 = vadd.f32 %v579_v49, %v399_v43  ;;  %v404_v56 = vld [vmem:[%s4138_s0 + $0x4f0] sm:$0xff]  ;;  %v582_v57 = vld [vmem:[%s4139_s1 + $0x4e0] sm:$0xff] }
  0x78   : > { %v1040_v51 = vpack.c.bf16 %v936_v39, %v934_v38  ;;  %v761_v54 = vadd.f32 %v581_v50, %v401_v48  ;;  %1130 = vst.msk [vmem:[#allocation2 + $0x248] sm:$0xff] %vm1057_vm0, %v1039_v44  ;;  %v938_v58 = vmax.f32 %v758_v46, 0.0  ;;  %v940_v59 = vmax.f32 %v760_v47, 0.0  ;;  %v584_v60 = vld [vmem:[%s4139_s1 + $0x4f0] sm:$0xff]  ;;  %v403_v62 = vld [vmem:[%s4138_s0 + $0x4e8] sm:$0xff]  ;;  %v405_v63 = vld [vmem:[%s4138_s0 + $0x4f8] sm:$0xff] }
  0x79   : > { %v762_v61 = vadd.f32 %v582_v57, %v402_v55  ;;  %v1041_v0 = vpack.c.bf16 %v937_v52, %v935_v45  ;;  %v939_v1 = vmax.f32 %v759_v53, 0.0  ;;  %v764_v3 = vadd.f32 %v584_v60, %v404_v56  ;;  %v583_v4 = vld [vmem:[%s4139_s1 + $0x4e8] sm:$0xff]  ;;  %v585_v5 = vld [vmem:[%s4139_s1 + $0x4f8] sm:$0xff]  ;;  %v406_v6 = vld [vmem:[%s4138_s0 + $0x500] sm:$0xff] }
  0x7a   : > { %1131 = vst [vmem:[#allocation2 + $0x250] sm:$0xff] %v1040_v51  ;;  %v941_v2 = vmax.f32 %v761_v54, 0.0  ;;  %v1042_v7 = vpack.c.bf16 %v940_v59, %v938_v58  ;;  %v763_v9 = vadd.f32 %v583_v4, %v403_v62  ;;  %v765_v10 = vadd.f32 %v585_v5, %v405_v63  ;;  %v408_v11 = vld [vmem:[%s4138_s0 + $0x510] sm:$0xff]  ;;  %v586_v12 = vld [vmem:[%s4139_s1 + $0x500] sm:$0xff]  ;;  %v407_v18 = vld [vmem:[%s4138_s0 + $0x508] sm:$0xff] }
  0x7b   : > { %v942_v8 = vmax.f32 %v762_v61, 0.0  ;;  %v588_v13 = vld [vmem:[%s4139_s1 + $0x510] sm:$0xff]  ;;  %1132 = vst.msk [vmem:[#allocation2 + $0x258] sm:$0xff] %vm1057_vm0, %v1041_v0  ;;  %v944_v15 = vmax.f32 %v764_v3, 0.0  ;;  %v766_v16 = vadd.f32 %v586_v12, %v406_v6  ;;  %v409_v19 = vld [vmem:[%s4138_s0 + $0x518] sm:$0xff]  ;;  %v587_v20 = vld [vmem:[%s4139_s1 + $0x508] sm:$0xff] }
  0x7c   : > { %v1043_v14 = vpack.c.bf16 %v941_v2, %v939_v1  ;;  %v768_v17 = vadd.f32 %v588_v13, %v408_v11  ;;  %1133 = vst [vmem:[#allocation2 + $0x260] sm:$0xff] %v1042_v7  ;;  %v943_v21 = vmax.f32 %v763_v9, 0.0  ;;  %v945_v22 = vmax.f32 %v765_v10, 0.0  ;;  %v589_v23 = vld [vmem:[%s4139_s1 + $0x518] sm:$0xff]  ;;  %v410_v25 = vld [vmem:[%s4138_s0 + $0x520] sm:$0xff]  ;;  %v412_v26 = vld [vmem:[%s4138_s0 + $0x530] sm:$0xff] }
  0x7d   : > { %v767_v24 = vadd.f32 %v587_v20, %v407_v18  ;;  %v1044_v27 = vpack.c.bf16 %v944_v15, %v942_v8  ;;  %v946_v28 = vmax.f32 %v766_v16, 0.0  ;;  %v769_v30 = vadd.f32 %v589_v23, %v409_v19  ;;  %v590_v31 = vld [vmem:[%s4139_s1 + $0x520] sm:$0xff]  ;;  %v592_v32 = vld [vmem:[%s4139_s1 + $0x530] sm:$0xff]  ;;  %v411_v33 = vld [vmem:[%s4138_s0 + $0x528] sm:$0xff] }
  0x7e   : > { %1134 = vst.msk [vmem:[#allocation2 + $0x268] sm:$0xff] %vm1057_vm0, %v1043_v14  ;;  %v948_v29 = vmax.f32 %v768_v17, 0.0  ;;  %v1045_v34 = vpack.c.bf16 %v945_v22, %v943_v21  ;;  %v770_v36 = vadd.f32 %v590_v31, %v410_v25  ;;  %v772_v37 = vadd.f32 %v592_v32, %v412_v26  ;;  %v413_v38 = vld [vmem:[%s4138_s0 + $0x538] sm:$0xff]  ;;  %v591_v39 = vld [vmem:[%s4139_s1 + $0x528] sm:$0xff]  ;;  %v414_v45 = vld [vmem:[%s4138_s0 + $0x540] sm:$0xff] }
  0x7f   : > { %v947_v35 = vmax.f32 %v767_v24, 0.0  ;;  %v593_v40 = vld [vmem:[%s4139_s1 + $0x538] sm:$0xff]  ;;  %1135 = vst [vmem:[#allocation2 + $0x270] sm:$0xff] %v1044_v27  ;;  %v949_v42 = vmax.f32 %v769_v30, 0.0  ;;  %v771_v43 = vadd.f32 %v591_v39, %v411_v33  ;;  %v416_v46 = vld [vmem:[%s4138_s0 + $0x550] sm:$0xff]  ;;  %v594_v47 = vld [vmem:[%s4139_s1 + $0x540] sm:$0xff] }
  0x80   : > { %v1046_v41 = vpack.c.bf16 %v948_v29, %v946_v28  ;;  %v773_v44 = vadd.f32 %v593_v40, %v413_v38  ;;  %1136 = vst.msk [vmem:[#allocation2 + $0x278] sm:$0xff] %vm1057_vm0, %v1045_v34  ;;  %v950_v48 = vmax.f32 %v770_v36, 0.0  ;;  %v952_v49 = vmax.f32 %v772_v37, 0.0  ;;  %v596_v50 = vld [vmem:[%s4139_s1 + $0x550] sm:$0xff]  ;;  %v415_v52 = vld [vmem:[%s4138_s0 + $0x548] sm:$0xff]  ;;  %v417_v53 = vld [vmem:[%s4138_s0 + $0x558] sm:$0xff] }
  0x81   : > { %v774_v51 = vadd.f32 %v594_v47, %v414_v45  ;;  %v1047_v54 = vpack.c.bf16 %v949_v42, %v947_v35  ;;  %v951_v55 = vmax.f32 %v771_v43, 0.0  ;;  %v776_v57 = vadd.f32 %v596_v50, %v416_v46  ;;  %v595_v58 = vld [vmem:[%s4139_s1 + $0x548] sm:$0xff]  ;;  %v597_v59 = vld [vmem:[%s4139_s1 + $0x558] sm:$0xff]  ;;  %v418_v60 = vld [vmem:[%s4138_s0 + $0x560] sm:$0xff] }
  0x82   : > { %1137 = vst [vmem:[#allocation2 + $0x280] sm:$0xff] %v1046_v41  ;;  %v953_v56 = vmax.f32 %v773_v44, 0.0  ;;  %v1048_v61 = vpack.c.bf16 %v952_v49, %v950_v48  ;;  %v775_v63 = vadd.f32 %v595_v58, %v415_v52  ;;  %v777_v0 = vadd.f32 %v597_v59, %v417_v53  ;;  %v420_v1 = vld [vmem:[%s4138_s0 + $0x570] sm:$0xff]  ;;  %v598_v2 = vld [vmem:[%s4139_s1 + $0x560] sm:$0xff]  ;;  %v419_v8 = vld [vmem:[%s4138_s0 + $0x568] sm:$0xff] }
  0x83   : > { %v954_v62 = vmax.f32 %v774_v51, 0.0  ;;  %v600_v3 = vld [vmem:[%s4139_s1 + $0x570] sm:$0xff]  ;;  %1138 = vst.msk [vmem:[#allocation2 + $0x288] sm:$0xff] %vm1057_vm0, %v1047_v54  ;;  %v956_v5 = vmax.f32 %v776_v57, 0.0  ;;  %v778_v6 = vadd.f32 %v598_v2, %v418_v60  ;;  %v421_v9 = vld [vmem:[%s4138_s0 + $0x578] sm:$0xff]  ;;  %v599_v10 = vld [vmem:[%s4139_s1 + $0x568] sm:$0xff] }
  0x84   : > { %v1049_v4 = vpack.c.bf16 %v953_v56, %v951_v55  ;;  %v780_v7 = vadd.f32 %v600_v3, %v420_v1  ;;  %1139 = vst [vmem:[#allocation2 + $0x290] sm:$0xff] %v1048_v61  ;;  %v955_v11 = vmax.f32 %v775_v63, 0.0  ;;  %v957_v12 = vmax.f32 %v777_v0, 0.0  ;;  %v601_v13 = vld [vmem:[%s4139_s1 + $0x578] sm:$0xff]  ;;  %v422_v15 = vld [vmem:[%s4138_s0 + $0x580] sm:$0xff]  ;;  %v424_v16 = vld [vmem:[%s4138_s0 + $0x590] sm:$0xff] }
  0x85   : > { %v779_v14 = vadd.f32 %v599_v10, %v419_v8  ;;  %v1050_v17 = vpack.c.bf16 %v956_v5, %v954_v62  ;;  %v958_v18 = vmax.f32 %v778_v6, 0.0  ;;  %v781_v20 = vadd.f32 %v601_v13, %v421_v9  ;;  %v602_v21 = vld [vmem:[%s4139_s1 + $0x580] sm:$0xff]  ;;  %v604_v22 = vld [vmem:[%s4139_s1 + $0x590] sm:$0xff]  ;;  %v423_v23 = vld [vmem:[%s4138_s0 + $0x588] sm:$0xff] }
  0x86   : > { %1140 = vst.msk [vmem:[#allocation2 + $0x298] sm:$0xff] %vm1057_vm0, %v1049_v4  ;;  %v960_v19 = vmax.f32 %v780_v7, 0.0  ;;  %v1051_v24 = vpack.c.bf16 %v957_v12, %v955_v11  ;;  %v782_v26 = vadd.f32 %v602_v21, %v422_v15  ;;  %v784_v27 = vadd.f32 %v604_v22, %v424_v16  ;;  %v425_v28 = vld [vmem:[%s4138_s0 + $0x598] sm:$0xff]  ;;  %v603_v29 = vld [vmem:[%s4139_s1 + $0x588] sm:$0xff] }
  0x87   : > { %v959_v25 = vmax.f32 %v779_v14, 0.0  ;;  %v605_v30 = vld [vmem:[%s4139_s1 + $0x598] sm:$0xff]  ;;  %1141 = vst [vmem:[#allocation2 + $0x2a0] sm:$0xff] %v1050_v17  ;;  %v961_v32 = vmax.f32 %v781_v20, 0.0  ;;  %v783_v33 = vadd.f32 %v603_v29, %v423_v23 }
  0x88   : > { %v1052_v31 = vpack.c.bf16 %v960_v19, %v958_v18  ;;  %v785_v34 = vadd.f32 %v605_v30, %v425_v28  ;;  %1142 = vst.msk [vmem:[#allocation2 + $0x2a8] sm:$0xff] %vm1057_vm0, %v1051_v24  ;;  %v962_v35 = vmax.f32 %v782_v26, 0.0  ;;  %v964_v36 = vmax.f32 %v784_v27, 0.0 }
  0x89   : > { %v1053_v37 = vpack.c.bf16 %v961_v32, %v959_v25  ;;  %v963_v38 = vmax.f32 %v783_v33, 0.0 }
  0x8a   : > { %1143 = vst [vmem:[#allocation2 + $0x2b0] sm:$0xff] %v1052_v31  ;;  %v965_v39 = vmax.f32 %v785_v34, 0.0  ;;  %v1054_v40 = vpack.c.bf16 %v964_v36, %v962_v35 }
  0x8b   : > { %1144 = vst.msk [vmem:[#allocation2 + $0x2b8] sm:$0xff] %vm1057_vm0, %v1053_v37 }
  0x8c   : > { %v1055_v41 = vpack.c.bf16 %v965_v39, %v963_v38  ;;  %1145 = vst [vmem:[#allocation2 + $0x2c0] sm:$0xff] %v1054_v40 }
  0x8e   : > { %1146 = vst.msk [vmem:[#allocation2 + $0x2c8] sm:$0xff] %vm1057_vm0, %v1055_v41 }
  0x8f PF: > { %v1418_v42 = vld [vmem:[#allocation2 + $0x8] sm:$0xff]  ;;  %v1417_v44 = vld [vmem:[#allocation2] sm:$0xff]  ;;  %v1420_v46 = vld [vmem:[#allocation2 + $0x18] sm:$0xff]  ;;  %vm1507_vm1 = vcmask 654336   ;;  %vm2103_vm2 = vcmask 556032  }
  0x90   : > { %v3683_v43 = vld [vmem:[#allocation2 + $0x108] sm:$0xff]  ;;  %1553 = vmatprep.subr.bf16.mxu1 %v1418_v42  ;;  %v3686_v45 = vld [vmem:[#allocation2 + $0x100] sm:$0xff]  ;;  %v3688_v47 = vld [vmem:[#allocation2 + $0x118] sm:$0xff] }
  0x91   : > { %1736 = vmatprep.subr.bf16.mxu0 %v3683_v43  ;;  %1554 = vmatpush1.bf16.msra.mxu1 %v1417_v44  ;;  %v1419_v48 = vld [vmem:[#allocation2 + $0x10] sm:$0xff]  ;;  %v1422_v50 = vld [vmem:[#allocation2 + $0x28] sm:$0xff]  ;;  %v1421_v52 = vld [vmem:[#allocation2 + $0x20] sm:$0xff] }
  0x92   : > { %1737 = vmatpush1.bf16.msra.mxu0 %v3686_v45  ;;  %1555 = vmatprep.subr.bf16.mxu1 %v1420_v46  ;;  %v3692_v49 = vld [vmem:[#allocation2 + $0x110] sm:$0xff]  ;;  %v3694_v51 = vld [vmem:[#allocation2 + $0x128] sm:$0xff]  ;;  %v3698_v53 = vld [vmem:[#allocation2 + $0x120] sm:$0xff] }
  0x93   : > { %1738 = vmatprep.subr.bf16.mxu0 %v3688_v47  ;;  %v1424_v54 = vld [vmem:[#allocation2 + $0x38] sm:$0xff]  ;;  %v1423_v56 = vld [vmem:[#allocation2 + $0x30] sm:$0xff]  ;;  %v1426_v58 = vld [vmem:[#allocation2 + $0x48] sm:$0xff] }
  0x94   : > { %v3700_v55 = vld [vmem:[#allocation2 + $0x138] sm:$0xff]  ;;  %v3704_v57 = vld [vmem:[#allocation2 + $0x130] sm:$0xff]  ;;  %v3706_v59 = vld [vmem:[#allocation2 + $0x148] sm:$0xff] }
  0x95   : > { %1556 = vmatpush1.bf16.msra.mxu1 %v1419_v48  ;;  %v1425_v60 = vld [vmem:[#allocation2 + $0x40] sm:$0xff]  ;;  %v1428_v62 = vld [vmem:[#allocation2 + $0x58] sm:$0xff]  ;;  %v1427_v0 = vld [vmem:[#allocation2 + $0x50] sm:$0xff] }
  0x96   : > { %1739 = vmatpush1.bf16.msra.mxu0 %v3692_v49  ;;  %1557 = vmatprep.subr.bf16.mxu1 %v1422_v50  ;;  %v3710_v61 = vld [vmem:[#allocation2 + $0x140] sm:$0xff]  ;;  %v3712_v63 = vld [vmem:[#allocation2 + $0x158] sm:$0xff]  ;;  %v3716_v1 = vld [vmem:[#allocation2 + $0x150] sm:$0xff] }
  0x97   : > { %1740 = vmatprep.subr.bf16.mxu0 %v3694_v51  ;;  %v1430_v2 = vld [vmem:[#allocation2 + $0x68] sm:$0xff]  ;;  %v1154_v5 = vld [vmem:[%s2556_s24 + $0x38] sm:$0xff]  ;;  %v1429_v9 = vld [vmem:[#allocation2 + $0x60] sm:$0xff] }
  0x98   : > { %v3718_v3 = vld [vmem:[#allocation2 + $0x168] sm:$0xff]  ;;  %v1150_v7 = vld [vmem:[%s2556_s24 + $0x18] sm:$0xff]  ;;  %v3726_v10 = vld [vmem:[#allocation2 + $0x160] sm:$0xff] }
  0x99   : > { %1558 = vmatpush1.bf16.msra.mxu1 %v1421_v52  ;;  %v1148_v4 = vld [vmem:[%s2556_s24 + $0x8] sm:$0xff]  ;;  %v1432_v12 = vld [vmem:[#allocation2 + $0x78] sm:$0xff]  ;;  %v1431_v14 = vld [vmem:[#allocation2 + $0x70] sm:$0xff] }
  0x9a   : > { %1741 = vmatpush1.bf16.msra.mxu0 %v3698_v53  ;;  %1559 = vmatprep.subr.bf16.mxu1 %v1424_v54  ;;  %v1328_v6 = vpack.c.bf16 %v1154_v5, %v1148_v4  ;;  %v1156_v8 = vld [vmem:[%s2556_s24 + $0x48] sm:$0xff]  ;;  %v3728_v13 = vld [vmem:[#allocation2 + $0x178] sm:$0xff]  ;;  %v3732_v15 = vld [vmem:[#allocation2 + $0x170] sm:$0xff] }
  0x9b   : > { %1742 = vmatprep.subr.bf16.mxu0 %v3700_v55  ;;  %v1330_v11 = vpack.c.bf16 %v1156_v8, %v1150_v7  ;;  %v1434_v16 = vld [vmem:[#allocation2 + $0x88] sm:$0xff]  ;;  %v1433_v18 = vld [vmem:[#allocation2 + $0x80] sm:$0xff]  ;;  %v1436_v20 = vld [vmem:[#allocation2 + $0x98] sm:$0xff] }
  0x9c   : > { %1585 = vmatprep.mubr.bf16.mxu1 %v1328_v6  ;;  %v3734_v17 = vld [vmem:[#allocation2 + $0x188] sm:$0xff]  ;;  %v3738_v19 = vld [vmem:[#allocation2 + $0x180] sm:$0xff]  ;;  %v3740_v21 = vld [vmem:[#allocation2 + $0x198] sm:$0xff] }
  0x9d   : > { %1560 = vmatpush1.bf16.msra.mxu1 %v1423_v56  ;;  %1768 = vmatprep.mubr.bf16.mxu0 %v1330_v11  ;;  %v1435_v22 = vld [vmem:[#allocation2 + $0x90] sm:$0xff]  ;;  %v1438_v24 = vld [vmem:[#allocation2 + $0xa8] sm:$0xff]  ;;  %v1437_v26 = vld [vmem:[#allocation2 + $0xa0] sm:$0xff] }
  0x9e   : > { %1743 = vmatpush1.bf16.msra.mxu0 %v3704_v57  ;;  %1561 = vmatprep.subr.bf16.mxu1 %v1426_v58  ;;  %v3744_v23 = vld [vmem:[#allocation2 + $0x190] sm:$0xff]  ;;  %v3746_v25 = vld [vmem:[#allocation2 + $0x1a8] sm:$0xff]  ;;  %v3750_v27 = vld [vmem:[#allocation2 + $0x1a0] sm:$0xff] }
  0x9f   : > { %1744 = vmatprep.subr.bf16.mxu0 %v3706_v59  ;;  %v1440_v28 = vld [vmem:[#allocation2 + $0xb8] sm:$0xff]  ;;  %v1439_v30 = vld [vmem:[#allocation2 + $0xb0] sm:$0xff]  ;;  %v1442_v32 = vld [vmem:[#allocation2 + $0xc8] sm:$0xff] }
  0xa0   : > { %v3752_v29 = vld [vmem:[#allocation2 + $0x1b8] sm:$0xff]  ;;  %v3756_v31 = vld [vmem:[#allocation2 + $0x1b0] sm:$0xff]  ;;  %v3758_v33 = vld [vmem:[#allocation2 + $0x1c8] sm:$0xff] }
  0xa1   : > { %1562 = vmatpush1.bf16.msra.mxu1 %v1425_v60  ;;  %v1441_v34 = vld [vmem:[#allocation2 + $0xc0] sm:$0xff]  ;;  %v1444_v36 = vld [vmem:[#allocation2 + $0xd8] sm:$0xff]  ;;  %v1443_v38 = vld [vmem:[#allocation2 + $0xd0] sm:$0xff] }
  0xa2   : > { %1745 = vmatpush1.bf16.msra.mxu0 %v3710_v61  ;;  %1563 = vmatprep.subr.bf16.mxu1 %v1428_v62  ;;  %v3762_v35 = vld [vmem:[#allocation2 + $0x1c0] sm:$0xff]  ;;  %v3764_v37 = vld [vmem:[#allocation2 + $0x1d8] sm:$0xff]  ;;  %v3768_v39 = vld [vmem:[#allocation2 + $0x1d0] sm:$0xff] }
  0xa3   : > { %1746 = vmatprep.subr.bf16.mxu0 %v3712_v63  ;;  %v1446_v40 = vld [vmem:[#allocation2 + $0xe8] sm:$0xff]  ;;  %v1445_v42 = vld [vmem:[#allocation2 + $0xe0] sm:$0xff]  ;;  %v1448_v46 = vld [vmem:[#allocation2 + $0xf8] sm:$0xff] }
  0xa4   : > { %v3770_v41 = vld [vmem:[#allocation2 + $0x1e8] sm:$0xff]  ;;  %v3774_v44 = vld [vmem:[#allocation2 + $0x1e0] sm:$0xff]  ;;  %v3776_v48 = vld [vmem:[#allocation2 + $0x1f8] sm:$0xff] }
  0xa5   : > { %1564 = vmatpush1.bf16.msra.mxu1 %v1427_v0  ;;  %v1447_v50 = vld [vmem:[#allocation2 + $0xf0] sm:$0xff]  ;;  %v1147_v52 = vld [vmem:[%s2556_s24] sm:$0xff]  ;;  %v1482_v62 = vld [vmem:[#allocation2 + $0x208] sm:$0xff] }
  0xa6   : > { %1747 = vmatpush1.bf16.msra.mxu0 %v3716_v1  ;;  %1565 = vmatprep.subr.bf16.mxu1 %v1430_v2  ;;  %v1153_v54 = vld [vmem:[%s2556_s24 + $0x30] sm:$0xff]  ;;  %v1155_v58 = vld [vmem:[%s2556_s24 + $0x40] sm:$0xff]  ;;  %v1160_v0 = vld [vmem:[%s2556_s24 + $0x68] sm:$0xff] }
  0xa7   : > { %1748 = vmatprep.subr.bf16.mxu0 %v3718_v3  ;;  %v1149_v56 = vld [vmem:[%s2556_s24 + $0x10] sm:$0xff]  ;;  %v1166_v2 = vld [vmem:[%s2556_s24 + $0x98] sm:$0xff]  ;;  %v1168_v5 = vld [vmem:[%s2556_s24 + $0xa8] sm:$0xff]  ;;  %v1327_v6 = vpack.c.bf16 %v1153_v54, %v1147_v52 }
  0xa8   : > { %v3784_v60 = vld [vmem:[#allocation2 + $0x1f0] sm:$0xff]  ;;  %v1162_v4 = vld [vmem:[%s2556_s24 + $0x78] sm:$0xff]  ;;  %v1329_v7 = vpack.c.bf16 %v1155_v58, %v1149_v56  ;;  %v1481_v8 = vld [vmem:[#allocation2 + $0x200] sm:$0xff] }
  0xa9   : > { %1566 = vmatpush1.bf16.msra.mxu1 %v1429_v9  ;;  %v1334_v9 = vpack.c.bf16 %v1166_v2, %v1160_v0  ;;  %v1336_v11 = vpack.c.bf16 %v1168_v5, %v1162_v4  ;;  %v1184_v52 = vld [vmem:[%s2556_s24 + $0x128] sm:$0xff]  ;;  %v1190_v54 = vld [vmem:[%s2556_s24 + $0x158] sm:$0xff]  ;;  %v1489_v4 = vld [vmem:[#allocation2 + $0x240] sm:$0xff] }
  0xaa   : > { %1749 = vmatpush1.bf16.msra.mxu0 %v3726_v10  ;;  %1567 = vmatprep.subr.bf16.mxu1 %v1432_v12  ;;  %v1159_v12 = vld [vmem:[%s2556_s24 + $0x60] sm:$0xff]  ;;  %v1186_v56 = vld [vmem:[%s2556_s24 + $0x138] sm:$0xff]  ;;  %v1192_v58 = vld [vmem:[%s2556_s24 + $0x168] sm:$0xff]  ;;  %v1346_v2 = vpack.c.bf16 %v1190_v54, %v1184_v52 }
  0xab   : > { %1750 = vmatprep.subr.bf16.mxu0 %v3728_v13  ;;  %v1492_v5 = vld [vmem:[#allocation2 + $0x258] sm:$0xff]  ;;  %v1209_v52 = vld [vmem:[%s2556_s24 + $0x1f0] sm:$0xff] }
  0xac   : > { %v1499_v54 = vld [vmem:[#allocation2 + $0x290] sm:$0xff] }
  0xad   : > { %1568 = vmatpush1.bf16.msra.mxu1 %v1431_v14  ;;  %v1484_v14 = vld [vmem:[#allocation2 + $0x218] sm:$0xff] }
  0xae   : > { %1751 = vmatpush1.bf16.msra.mxu0 %v3732_v15  ;;  %1569 = vmatprep.subr.bf16.mxu1 %v1434_v16  ;;  %v1165_v16 = vld [vmem:[%s2556_s24 + $0x90] sm:$0xff] }
  0xaf   : > { %1752 = vmatprep.subr.bf16.mxu0 %v3734_v17 }
  0xb1   : > { %1570 = vmatpush1.bf16.msra.mxu1 %v1433_v18  ;;  %v1161_v18 = vld [vmem:[%s2556_s24 + $0x70] sm:$0xff] }
  0xb2   : > { %1753 = vmatpush1.bf16.msra.mxu0 %v3738_v19  ;;  %1571 = vmatprep.subr.bf16.mxu1 %v1436_v20  ;;  %v1167_v20 = vld [vmem:[%s2556_s24 + $0xa0] sm:$0xff] }
  0xb3   : > { %1754 = vmatprep.subr.bf16.mxu0 %v3740_v21 }
  0xb5   : > { %1572 = vmatpush1.bf16.msra.mxu1 %v1435_v22  ;;  %v1172_v22 = vld [vmem:[%s2556_s24 + $0xc8] sm:$0xff] }
  0xb6   : > { %1755 = vmatpush1.bf16.msra.mxu0 %v3744_v23  ;;  %1573 = vmatprep.subr.bf16.mxu1 %v1438_v24  ;;  %v1178_v24 = vld [vmem:[%s2556_s24 + $0xf8] sm:$0xff] }
  0xb7   : > { %1756 = vmatprep.subr.bf16.mxu0 %v3746_v25 }
  0xb9   : > { %1574 = vmatpush1.bf16.msra.mxu1 %v1437_v26  ;;  %v1486_v26 = vld [vmem:[#allocation2 + $0x228] sm:$0xff] }
  0xba   : > { %1757 = vmatpush1.bf16.msra.mxu0 %v3750_v27  ;;  %1575 = vmatprep.subr.bf16.mxu1 %v1440_v28  ;;  %v1174_v28 = vld [vmem:[%s2556_s24 + $0xd8] sm:$0xff] }
  0xbb   : > { %1758 = vmatprep.subr.bf16.mxu0 %v3752_v29 }
  0xbd   : > { %1576 = vmatpush1.bf16.msra.mxu1 %v1439_v30  ;;  %v1180_v30 = vld [vmem:[%s2556_s24 + $0x108] sm:$0xff] }
  0xbe   : > { %1759 = vmatpush1.bf16.msra.mxu0 %v3756_v31  ;;  %1577 = vmatprep.subr.bf16.mxu1 %v1442_v32  ;;  %v1333_v32 = vpack.c.bf16 %v1165_v16, %v1159_v12  ;;  %v1202_v12 = vld [vmem:[%s2556_s24 + $0x1b8] sm:$0xff] }
  0xbf   : > { %1760 = vmatprep.subr.bf16.mxu0 %v3758_v33 }
  0xc1   : > { %1578 = vmatpush1.bf16.msra.mxu1 %v1441_v34  ;;  %v1340_v34 = vpack.c.bf16 %v1178_v24, %v1172_v22  ;;  %v1496_v24 = vld [vmem:[#allocation2 + $0x278] sm:$0xff] }
  0xc2   : > { %1761 = vmatpush1.bf16.msra.mxu0 %v3762_v35  ;;  %1579 = vmatprep.subr.bf16.mxu1 %v1444_v36  ;;  %v1485_v36 = vld [vmem:[#allocation2 + $0x220] sm:$0xff] }
  0xc3   : > { %1762 = vmatprep.subr.bf16.mxu0 %v3764_v37 }
  0xc5   : > { %1580 = vmatpush1.bf16.msra.mxu1 %v1443_v38  ;;  %v1171_v38 = vld [vmem:[%s2556_s24 + $0xc0] sm:$0xff] }
  0xc6   : > { %1763 = vmatpush1.bf16.msra.mxu0 %v3768_v39  ;;  %1581 = vmatprep.subr.bf16.mxu1 %v1446_v40  ;;  %v1488_v40 = vld [vmem:[#allocation2 + $0x238] sm:$0xff] }
  0xc7   : > { %1764 = vmatprep.subr.bf16.mxu0 %v3770_v41 }
  0xc9   : > { %1582 = vmatpush1.bf16.msra.mxu1 %v1445_v42  ;;  %v1177_v42 = vld [vmem:[%s2556_s24 + $0xf0] sm:$0xff] }
  0xca   : > { %1765 = vmatpush1.bf16.msra.mxu0 %v3774_v44  ;;  %1583 = vmatprep.subr.bf16.mxu1 %v1448_v46  ;;  %v1173_v46 = vld [vmem:[%s2556_s24 + $0xd0] sm:$0xff] }
  0xcb   : > { %1766 = vmatprep.subr.bf16.mxu0 %v3776_v48 }
  0xcd   : > { %1584 = vmatpush1.bf16.msra.mxu1 %v1447_v50  ;;  %v1487_v50 = vld [vmem:[#allocation2 + $0x230] sm:$0xff] }
  0xce   : > { %1767 = vmatpush1.bf16.msra.mxu0 %v3784_v60  ;;  %2309 = vmatprep.subr.bf16.mxu1 %v3683_v43  ;;  %v1483_v43 = vld [vmem:[#allocation2 + $0x210] sm:$0xff] }
  0xcf   : > { %1919 = vmatprep.subr.bf16.mxu0 %v1482_v62  ;;  %v1339_v62 = vpack.c.bf16 %v1177_v42, %v1171_v38  ;;  %v1497_v42 = vld [vmem:[#allocation2 + $0x280] sm:$0xff] }
  0xd0   : > { %1586 = vmatmul.mubr.bf16.vlgmr.msra.gmra.mrb[0].mxu1 %v1327_v6  ;;  %v1189_v6 = vld [vmem:[%s2556_s24 + $0x150] sm:$0xff] }
  0xd1   : > { %1769 = vmatmul.mubr.bf16.vlgmr.msra.gmra.mrb[0].mxu0 %v1329_v7  ;;  %2325 = vmatpush1.bf16.msra.mxu1 %v3686_v45  ;;  %v1335_v45 = vpack.c.bf16 %v1167_v20, %v1161_v18  ;;  %v1185_v7 = vld [vmem:[%s2556_s24 + $0x130] sm:$0xff] }
  0xd2   : > { %1920 = vmatpush1.bf16.msra.mxu0 %v1481_v8  ;;  %1595 = vmatprep.mubr.bf16.mxu1 %v1334_v9  ;;  %v1191_v8 = vld [vmem:[%s2556_s24 + $0x160] sm:$0xff]  ;;  %v1491_v9 = vld [vmem:[#allocation2 + $0x250] sm:$0xff] }
  0xd3   : > { %1778 = vmatprep.mubr.bf16.mxu0 %v1336_v11  ;;  %2310 = vmatprep.subr.bf16.mxu1 %v3688_v47  ;;  %v1342_v47 = vpack.c.bf16 %v1180_v30, %v1174_v28  ;;  %v1196_v11 = vld [vmem:[%s2556_s24 + $0x188] sm:$0xff]  ;;  %v1347_v18 = vpack.c.bf16 %v1191_v8, %v1185_v7  ;;  %v1197_v28 = vld [vmem:[%s2556_s24 + $0x190] sm:$0xff] }
  0xd4   : > { %1921 = vmatprep.subr.bf16.mxu0 %v1484_v14  ;;  %v1494_v14 = vld [vmem:[#allocation2 + $0x268] sm:$0xff]  ;;  %v1352_v20 = vpack.c.bf16 %v1202_v12, %v1196_v11  ;;  %v1495_v30 = vld [vmem:[#allocation2 + $0x270] sm:$0xff]  ;;  %v1238_v11 = vld [vmem:[%s2556_s24 + $0x2d8] sm:$0xff] }
  0xd5   : > { %2326 = vmatpush1.bf16.msra.mxu1 %v3692_v49  ;;  %v1179_v49 = vld [vmem:[%s2556_s24 + $0x100] sm:$0xff]  ;;  %v1221_v7 = vld [vmem:[%s2556_s24 + $0x250] sm:$0xff]  ;;  %v1506_v12 = vld [vmem:[#allocation2 + $0x2c8] sm:$0xff] }
  0xd6   : > { %1922 = vmatpush1.bf16.msra.mxu0 %v1483_v43  ;;  %2311 = vmatprep.subr.bf16.mxu1 %v3694_v51  ;;  %v1490_v51 = vld [vmem:[#allocation2 + $0x248] sm:$0xff]  ;;  %v1341_v0 = vpack.c.bf16 %v1179_v49, %v1173_v46  ;;  %v1493_v43 = vld [vmem:[#allocation2 + $0x260] sm:$0xff]  ;;  %v1500_v49 = vld [vmem:[#allocation2 + $0x298] sm:$0xff] }
  0xd7   : > { %1923 = vmatprep.subr.bf16.mxu0 %v1486_v26  ;;  %v1201_v26 = vld [vmem:[%s2556_s24 + $0x1b0] sm:$0xff] }
  0xd8   : > { %1596 = vmatmul.mubr.bf16.gmra.mrb[4].mxu1 %v1333_v32  ;;  %v1208_v32 = vld [vmem:[%s2556_s24 + $0x1e8] sm:$0xff]  ;;  %v1503_v8 = vld [vmem:[#allocation2 + $0x2b0] sm:$0xff] }
  0xd9   : > { %1779 = vmatmul.mubr.bf16.gmra.mrb[4].mxu0 %v1335_v45  ;;  %1605 = vmatprep.mubr.bf16.mxu1 %v1340_v34  ;;  %v1214_v45 = vld [vmem:[%s2556_s24 + $0x218] sm:$0xff]  ;;  %v1498_v34 = vld [vmem:[#allocation2 + $0x288] sm:$0xff] }
  0xda   : > { %1924 = vmatpush1.bf16.msra.mxu0 %v1485_v36  ;;  %1788 = vmatprep.mubr.bf16.mxu0 %v1342_v47  ;;  %v1210_v36 = vld [vmem:[%s2556_s24 + $0x1f8] sm:$0xff]  ;;  %v1216_v47 = vld [vmem:[%s2556_s24 + $0x228] sm:$0xff] }
  0xdb   : > { %2327 = vmatpush1.bf16.msra.mxu1 %v3698_v53  ;;  %1925 = vmatprep.subr.bf16.mxu0 %v1488_v40  ;;  %v1348_v53 = vpack.c.bf16 %v1192_v58, %v1186_v56  ;;  %v1358_v40 = vpack.c.bf16 %v1214_v45, %v1208_v32  ;;  %v1360_v46 = vpack.c.bf16 %v1216_v47, %v1210_v36  ;;  %v1502_v56 = vld [vmem:[#allocation2 + $0x2a8] sm:$0xff]  ;;  %v1222_v58 = vld [vmem:[%s2556_s24 + $0x258] sm:$0xff]  ;;  %v1243_v45 = vld [vmem:[%s2556_s24 + $0x300] sm:$0xff] }
  0xdc   : > { %2312 = vmatprep.subr.bf16.mxu1 %v3700_v55  ;;  %v1183_v55 = vld [vmem:[%s2556_s24 + $0x120] sm:$0xff]  ;;  %v1256_v36 = vld [vmem:[%s2556_s24 + $0x368] sm:$0xff]  ;;  %v1262_v47 = vld [vmem:[%s2556_s24 + $0x398] sm:$0xff] }
  0xdd   : > { %v1345_v16 = vpack.c.bf16 %v1189_v6, %v1183_v55  ;;  %v1504_v55 = vld [vmem:[#allocation2 + $0x2b8] sm:$0xff]  ;;  %v1225_v6 = vld [vmem:[%s2556_s24 + $0x270] sm:$0xff] }
  0xde   : > { %1926 = vmatpush1.bf16.msra.mxu0 %v1487_v50  ;;  %v1213_v50 = vld [vmem:[%s2556_s24 + $0x210] sm:$0xff] }
  0xdf   : > { %1927 = vmatprep.subr.bf16.mxu0 %v1490_v51  ;;  %2328 = vmatpush1.bf16.msra.mxu1 %v3704_v57  ;;  %v1198_v57 = vld [vmem:[%s2556_s24 + $0x198] sm:$0xff] }
  0xe0   : > { %2313 = vmatprep.subr.bf16.mxu1 %v3706_v59  ;;  %1606 = vmatmul.mubr.bf16.gmra.mrb[8].mxu1 %v1339_v62  ;;  %v1204_v59 = vld [vmem:[%s2556_s24 + $0x1c8] sm:$0xff]  ;;  %v1226_v51 = vld [vmem:[%s2556_s24 + $0x278] sm:$0xff] }
  0xe1   : > { %1789 = vmatmul.mubr.bf16.gmra.mrb[8].mxu0 %v1341_v0  ;;  %1615 = vmatprep.mubr.bf16.mxu1 %v1346_v2  ;;  %v1354_v22 = vpack.c.bf16 %v1204_v59, %v1198_v57  ;;  %v1228_v62 = vld [vmem:[%s2556_s24 + $0x288] sm:$0xff]  ;;  %v1158_v57 = vld [vmem:[%s2556_s24 + $0x58] sm:$0xff] }
  0xe2   : > { %1928 = vmatpush1.bf16.msra.mxu0 %v1489_v4  ;;  %1798 = vmatprep.mubr.bf16.mxu0 %v1348_v53  ;;  %v1501_v53 = vld [vmem:[#allocation2 + $0x2a0] sm:$0xff] }
  0xe3   : > { %1929 = vmatprep.subr.bf16.mxu0 %v1492_v5  ;;  %2329 = vmatpush1.bf16.msra.mxu1 %v3710_v61  ;;  %v1195_v61 = vld [vmem:[%s2556_s24 + $0x180] sm:$0xff]  ;;  %v1366_v5 = vpack.c.bf16 %v1228_v62, %v1222_v58  ;;  %v1280_v58 = vld [vmem:[%s2556_s24 + $0x428] sm:$0xff]  ;;  %v1286_v62 = vld [vmem:[%s2556_s24 + $0x458] sm:$0xff] }
  0xe4   : > { %2314 = vmatprep.subr.bf16.mxu1 %v3712_v63  ;;  %v1203_v63 = vld [vmem:[%s2556_s24 + $0x1c0] sm:$0xff] }
  0xe5   : > { %v1353_v38 = vpack.c.bf16 %v1203_v63, %v1197_v28 }
  0xe6   : > { %1930 = vmatpush1.bf16.msra.mxu0 %v1491_v9  ;;  %v1232_v9 = vld [vmem:[%s2556_s24 + $0x2a8] sm:$0xff] }
  0xe7   : > { %1931 = vmatprep.subr.bf16.mxu0 %v1494_v14  ;;  %2330 = vmatpush1.bf16.msra.mxu1 %v3716_v1  ;;  %v1351_v1 = vpack.c.bf16 %v1201_v26, %v1195_v61  ;;  %v1152_v14 = vld [vmem:[%s2556_s24 + $0x28] sm:$0xff]  ;;  %v1170_v26 = vld [vmem:[%s2556_s24 + $0xb8] sm:$0xff] }
  0xe8   : > { %1616 = vmatmul.mubr.bf16.gmra.mrb[12].mxu1 %v1345_v16  ;;  %2315 = vmatprep.subr.bf16.mxu1 %v3718_v3  ;;  %v1207_v3 = vld [vmem:[%s2556_s24 + $0x1e0] sm:$0xff]  ;;  %v1370_v16 = vpack.c.bf16 %v1238_v11, %v1232_v9  ;;  %v1164_v61 = vld [vmem:[%s2556_s24 + $0x88] sm:$0xff]  ;;  %v1218_v11 = vld [vmem:[%s2556_s24 + $0x238] sm:$0xff] }
  0xe9   : > { %1799 = vmatmul.mubr.bf16.gmra.mrb[12].mxu0 %v1347_v18  ;;  %1625 = vmatprep.mubr.bf16.mxu1 %v1352_v20  ;;  %v1357_v0 = vpack.c.bf16 %v1213_v50, %v1207_v3  ;;  %v1505_v18 = vld [vmem:[#allocation2 + $0x2c0] sm:$0xff]  ;;  %v1332_v20 = vpack.c.bf16 %v1158_v57, %v1152_v14  ;;  %v1338_v32 = vpack.c.bf16 %v1170_v26, %v1164_v61  ;;  %v1268_v3 = vld [vmem:[%s2556_s24 + $0x3c8] sm:$0xff]  ;;  %v1274_v50 = vld [vmem:[%s2556_s24 + $0x3f8] sm:$0xff] }
  0xea   : > { %1932 = vmatpush1.bf16.msra.mxu0 %v1493_v43  ;;  %1808 = vmatprep.mubr.bf16.mxu0 %v1354_v22  ;;  %v1237_v43 = vld [vmem:[%s2556_s24 + $0x2d0] sm:$0xff]  ;;  %v1151_v22 = vld [vmem:[%s2556_s24 + $0x20] sm:$0xff]  ;;  %v1212_v9 = vld [vmem:[%s2556_s24 + $0x208] sm:$0xff] }
  0xeb   : > { %1933 = vmatprep.subr.bf16.mxu0 %v1496_v24  ;;  %2331 = vmatpush1.bf16.msra.mxu1 %v3726_v10  ;;  %v1215_v10 = vld [vmem:[%s2556_s24 + $0x220] sm:$0xff]  ;;  %v1244_v24 = vld [vmem:[%s2556_s24 + $0x308] sm:$0xff] }
  0xec   : > { %2316 = vmatprep.subr.bf16.mxu1 %v3728_v13  ;;  %v1220_v13 = vld [vmem:[%s2556_s24 + $0x248] sm:$0xff]  ;;  %v1359_v2 = vpack.c.bf16 %v1215_v10, %v1209_v52  ;;  %v1194_v10 = vld [vmem:[%s2556_s24 + $0x178] sm:$0xff] }
  0xed   : > { %v1364_v4 = vpack.c.bf16 %v1226_v51, %v1220_v13  ;;  %v1188_v52 = vld [vmem:[%s2556_s24 + $0x148] sm:$0xff]  ;;  %v1267_v51 = vld [vmem:[%s2556_s24 + $0x3c0] sm:$0xff] }
  0xee   : > { %1934 = vmatpush1.bf16.msra.mxu0 %v1495_v30  ;;  %v1350_v13 = vpack.c.bf16 %v1194_v10, %v1188_v52 }
  0xef   : > { %1935 = vmatprep.subr.bf16.mxu0 %v1498_v34  ;;  %2332 = vmatpush1.bf16.msra.mxu1 %v3732_v15  ;;  %v1219_v15 = vld [vmem:[%s2556_s24 + $0x240] sm:$0xff]  ;;  %v1249_v34 = vld [vmem:[%s2556_s24 + $0x330] sm:$0xff] }
  0xf0   : > { %1626 = vmatmul.mubr.bf16.gmra.mrb[16].mxu1 %v1351_v1  ;;  %2317 = vmatprep.subr.bf16.mxu1 %v3734_v17  ;;  %v1227_v17 = vld [vmem:[%s2556_s24 + $0x280] sm:$0xff]  ;;  %v1176_v1 = vld [vmem:[%s2556_s24 + $0xe8] sm:$0xff] }
  0xf1   : > { %1809 = vmatmul.mubr.bf16.gmra.mrb[16].mxu0 %v1353_v38  ;;  %1635 = vmatprep.mubr.bf16.mxu1 %v1358_v40  ;;  %v1365_v59 = vpack.c.bf16 %v1227_v17, %v1221_v7  ;;  %v1182_v38 = vld [vmem:[%s2556_s24 + $0x118] sm:$0xff]  ;;  %v1382_v40 = vpack.c.bf16 %v1262_v47, %v1256_v36  ;;  %v1205_v7 = vld [vmem:[%s2556_s24 + $0x1d0] sm:$0xff]  ;;  %v1292_v17 = vld [vmem:[%s2556_s24 + $0x488] sm:$0xff] }
  0xf2   : > { %1936 = vmatpush1.bf16.msra.mxu0 %v1497_v42  ;;  %1818 = vmatprep.mubr.bf16.mxu0 %v1360_v46  ;;  %v1344_v42 = vpack.c.bf16 %v1182_v38, %v1176_v1  ;;  %v1255_v46 = vld [vmem:[%s2556_s24 + $0x360] sm:$0xff] }
  0xf3   : > { %1937 = vmatprep.subr.bf16.mxu0 %v1500_v49  ;;  %2333 = vmatpush1.bf16.msra.mxu1 %v3738_v19  ;;  %v1363_v19 = vpack.c.bf16 %v1225_v6, %v1219_v15  ;;  %v1261_v49 = vld [vmem:[%s2556_s24 + $0x390] sm:$0xff]  ;;  %v1199_v6 = vld [vmem:[%s2556_s24 + $0x1a0] sm:$0xff] }
  0xf4   : > { %2318 = vmatprep.subr.bf16.mxu1 %v3740_v21  ;;  %v1231_v21 = vld [vmem:[%s2556_s24 + $0x2a0] sm:$0xff]  ;;  %v1285_v15 = vld [vmem:[%s2556_s24 + $0x450] sm:$0xff]  ;;  %v1355_v14 = vpack.c.bf16 %v1205_v7, %v1199_v6  ;;  %v1272_v6 = vld [vmem:[%s2556_s24 + $0x3e8] sm:$0xff] }
  0xf5   : > { %v1369_v28 = vpack.c.bf16 %v1237_v43, %v1231_v21  ;;  %v1304_v21 = vld [vmem:[%s2556_s24 + $0x4e8] sm:$0xff]  ;;  %v1310_v43 = vld [vmem:[%s2556_s24 + $0x518] sm:$0xff] }
  0xf6   : > { %1938 = vmatpush1.bf16.msra.mxu0 %v1499_v54  ;;  %v1388_v54 = vpack.c.bf16 %v1274_v50, %v1268_v3  ;;  %v1406_v61 = vpack.c.bf16 %v1310_v43, %v1304_v21  ;;  %v1278_v7 = vld [vmem:[%s2556_s24 + $0x418] sm:$0xff] }
  0xf7   : > { %1939 = vmatprep.subr.bf16.mxu0 %v1502_v56  ;;  %2334 = vmatpush1.bf16.msra.mxu1 %v3744_v23  ;;  %v1157_v23 = vld [vmem:[%s2556_s24 + $0x50] sm:$0xff] }
  0xf8   : > { %1636 = vmatmul.mubr.bf16.gmra.mrb[20].mxu1 %v1357_v0  ;;  %2319 = vmatprep.subr.bf16.mxu1 %v3746_v25  ;;  %v1250_v25 = vld [vmem:[%s2556_s24 + $0x338] sm:$0xff]  ;;  %v1331_v63 = vpack.c.bf16 %v1157_v23, %v1151_v22  ;;  %v1273_v56 = vld [vmem:[%s2556_s24 + $0x3f0] sm:$0xff]  ;;  %v1200_v0 = vld [vmem:[%s2556_s24 + $0x1a8] sm:$0xff] }
  0xf9   : > { %1819 = vmatmul.mubr.bf16.gmra.mrb[20].mxu0 %v1359_v2  ;;  %1645 = vmatprep.mubr.bf16.mxu1 %v1364_v4  ;;  %v1376_v30 = vpack.c.bf16 %v1250_v25, %v1244_v24  ;;  %v1387_v2 = vpack.c.bf16 %v1273_v56, %v1267_v51  ;;  %v1224_v22 = vld [vmem:[%s2556_s24 + $0x268] sm:$0xff]  ;;  %v1230_v23 = vld [vmem:[%s2556_s24 + $0x298] sm:$0xff] }
  0xfa   : > { %1940 = vmatpush1.bf16.msra.mxu0 %v1501_v53  ;;  %1828 = vmatprep.mubr.bf16.mxu0 %v1366_v5  ;;  %v1394_v53 = vpack.c.bf16 %v1286_v62, %v1280_v58  ;;  %v1368_v26 = vpack.c.bf16 %v1230_v23, %v1224_v22  ;;  %v1246_v51 = vld [vmem:[%s2556_s24 + $0x318] sm:$0xff]  ;;  %v1252_v56 = vld [vmem:[%s2556_s24 + $0x348] sm:$0xff] }
  0xfb   : > { %1941 = vmatprep.subr.bf16.mxu0 %v1504_v55  ;;  %2335 = vmatpush1.bf16.msra.mxu1 %v3750_v27  ;;  %v1163_v27 = vld [vmem:[%s2556_s24 + $0x80] sm:$0xff] }
  0xfc   : > { %2320 = vmatprep.subr.bf16.mxu1 %v3752_v29  ;;  %v1169_v29 = vld [vmem:[%s2556_s24 + $0xb0] sm:$0xff]  ;;  %v1279_v55 = vld [vmem:[%s2556_s24 + $0x420] sm:$0xff] }
  0xfe   : > { %1942 = vmatpush1.bf16.msra.mxu0 %v1503_v8  ;;  %v1298_v8 = vld [vmem:[%s2556_s24 + $0x4b8] sm:$0xff] }
  0xff   : > { %1943 = vmatprep.subr.bf16.mxu0 %v1506_v12  ;;  %2336 = vmatpush1.bf16.msra.mxu1 %v3756_v31  ;;  %v1375_v31 = vpack.c.bf16 %v1249_v34, %v1243_v45  ;;  %v1393_v12 = vpack.c.bf16 %v1285_v15, %v1279_v55  ;;  %v1400_v57 = vpack.c.bf16 %v1298_v8, %v1292_v17  ;;  %v1316_v45 = vld [vmem:[%s2556_s24 + $0x548] sm:$0xff]  ;;  %v1322_v34 = vld [vmem:[%s2556_s24 + $0x578] sm:$0xff] }
 0x100   : > { %1646 = vmatmul.mubr.bf16.gmra.mrb[24].mxu1 %v1363_v19  ;;  %2321 = vmatprep.subr.bf16.mxu1 %v3758_v33  ;;  %v1337_v33 = vpack.c.bf16 %v1169_v29, %v1163_v27  ;;  %v1362_v19 = vpack.c.bf16 %v1218_v11, %v1212_v9  ;;  %v1236_v27 = vld [vmem:[%s2556_s24 + $0x2c8] sm:$0xff]  ;;  %v1242_v29 = vld [vmem:[%s2556_s24 + $0x2f8] sm:$0xff]  ;;  %v1412_v1 = vpack.c.bf16 %v1322_v34, %v1316_v45 }
 0x101   : > { %1829 = vmatmul.mubr.bf16.gmra.mrb[24].mxu0 %v1365_v59  ;;  %1655 = vmatprep.mubr.bf16.mxu1 %v1370_v16  ;;  %v1291_v59 = vld [vmem:[%s2556_s24 + $0x480] sm:$0xff]  ;;  %v1297_v16 = vld [vmem:[%s2556_s24 + $0x4b0] sm:$0xff]  ;;  %v1374_v38 = vpack.c.bf16 %v1242_v29, %v1236_v27  ;;  %v1258_v55 = vld [vmem:[%s2556_s24 + $0x378] sm:$0xff]  ;;  %v1392_v11 = vpack.c.bf16 %v1278_v7, %v1272_v6 }
 0x102   : > { %1944 = vmatpush1.bf16.msra.mxu0 %v1505_v18  ;;  %2291 = vmatprep.mubr.msk.bf16.mxu0 %vm1507_vm1, %v1332_v20  ;;  %v1211_v18 = vld [vmem:[%s2556_s24 + $0x200] sm:$0xff]  ;;  %v1217_v20 = vld [vmem:[%s2556_s24 + $0x230] sm:$0xff]  ;;  %v1399_v24 = vpack.c.bf16 %v1297_v16, %v1291_v59  ;;  %v1264_v15 = vld [vmem:[%s2556_s24 + $0x3a8] sm:$0xff] }
 0x103   : > { %2337 = vmatpush1.bf16.msra.mxu1 %v3762_v35  ;;  %v1175_v35 = vld [vmem:[%s2556_s24 + $0xe0] sm:$0xff]  ;;  %v1361_v25 = vpack.c.bf16 %v1217_v20, %v1211_v18  ;;  %v1384_v9 = vpack.c.bf16 %v1264_v15, %v1258_v55  ;;  %v1270_v59 = vld [vmem:[%s2556_s24 + $0x3d8] sm:$0xff]  ;;  %v1276_v16 = vld [vmem:[%s2556_s24 + $0x408] sm:$0xff] }
 0x104   : > { %2322 = vmatprep.subr.bf16.mxu1 %v3764_v37  ;;  %v1181_v37 = vld [vmem:[%s2556_s24 + $0x110] sm:$0xff]  ;;  %v1284_v18 = vld [vmem:[%s2556_s24 + $0x448] sm:$0xff]  ;;  %v1290_v20 = vld [vmem:[%s2556_s24 + $0x478] sm:$0xff]  ;;  %v1390_v22 = vpack.c.bf16 %v1276_v16, %v1270_v59 }
 0x105   : > { %v1398_v23 = vpack.c.bf16 %v1290_v20, %v1284_v18  ;;  %v1317_v15 = vld [vmem:[%s2556_s24 + $0x550] sm:$0xff]  ;;  %v1323_v6 = vld [vmem:[%s2556_s24 + $0x580] sm:$0xff] }
 0x106   : > { %v1413_v7 = vpack.c.bf16 %v1323_v6, %v1317_v15 }
 0x107   : > { %2338 = vmatpush1.bf16.msra.mxu1 %v3768_v39  ;;  %v1381_v39 = vpack.c.bf16 %v1261_v49, %v1255_v46  ;;  %v1234_v46 = vld [vmem:[%s2556_s24 + $0x2b8] sm:$0xff]  ;;  %v1240_v49 = vld [vmem:[%s2556_s24 + $0x2e8] sm:$0xff] }
 0x108   : > { %1656 = vmatmul.mubr.bf16.gmra.mrb[28].mxu1 %v1369_v28  ;;  %2323 = vmatprep.subr.bf16.mxu1 %v3770_v41  ;;  %v1343_v41 = vpack.c.bf16 %v1181_v37, %v1175_v35  ;;  %v1303_v28 = vld [vmem:[%s2556_s24 + $0x4e0] sm:$0xff]  ;;  %v1248_v35 = vld [vmem:[%s2556_s24 + $0x328] sm:$0xff]  ;;  %v1254_v37 = vld [vmem:[%s2556_s24 + $0x358] sm:$0xff]  ;;  %v1372_v52 = vpack.c.bf16 %v1240_v49, %v1234_v46 }
 0x109   : > { %1952 = vmatmul.mubr.bf16.vlgmr.msra.gmra.mrb[0].mxu0 %v1331_v63  ;;  %1665 = vmatprep.mubr.bf16.mxu1 %v1376_v30  ;;  %v1309_v63 = vld [vmem:[%s2556_s24 + $0x510] sm:$0xff]  ;;  %v1223_v30 = vld [vmem:[%s2556_s24 + $0x260] sm:$0xff]  ;;  %v1380_v10 = vpack.c.bf16 %v1254_v37, %v1248_v35 }
 0x10a   : > { %2292 = vmatprep.mubr.msk.bf16.mxu0 %vm1507_vm1, %v1338_v32  ;;  %v1229_v32 = vld [vmem:[%s2556_s24 + $0x290] sm:$0xff]  ;;  %v1405_v36 = vpack.c.bf16 %v1309_v63, %v1303_v28  ;;  %v1282_v28 = vld [vmem:[%s2556_s24 + $0x438] sm:$0xff]  ;;  %v1288_v63 = vld [vmem:[%s2556_s24 + $0x468] sm:$0xff] }
 0x10b   : > { %2339 = vmatpush1.bf16.msra.mxu1 %v3774_v44  ;;  %v1187_v44 = vld [vmem:[%s2556_s24 + $0x140] sm:$0xff]  ;;  %v1367_v47 = vpack.c.bf16 %v1229_v32, %v1223_v30  ;;  %v1296_v30 = vld [vmem:[%s2556_s24 + $0x4a8] sm:$0xff]  ;;  %v1302_v32 = vld [vmem:[%s2556_s24 + $0x4d8] sm:$0xff]  ;;  %v1396_v27 = vpack.c.bf16 %v1288_v63, %v1282_v28 }
 0x10c   : > { %2324 = vmatprep.subr.bf16.mxu1 %v3776_v48  ;;  %v1193_v48 = vld [vmem:[%s2556_s24 + $0x170] sm:$0xff]  ;;  %v1404_v29 = vpack.c.bf16 %v1302_v32, %v1296_v30 }
 0x10d   : > { %v1349_v4 = vpack.c.bf16 %v1193_v48, %v1187_v44  ;;  %v1260_v44 = vld [vmem:[%s2556_s24 + $0x388] sm:$0xff]  ;;  %v1266_v48 = vld [vmem:[%s2556_s24 + $0x3b8] sm:$0xff] }
 0x10f   : > { %2340 = vmatpush1.bf16.msra.mxu1 %v3784_v60  ;;  %v1206_v60 = vld [vmem:[%s2556_s24 + $0x1d8] sm:$0xff] }
 0x110   : > { %1666 = vmatmul.mubr.bf16.gmra.mrb[32].mxu1 %v1375_v31  ;;  %v1356_v5 = vpack.c.bf16 %v1206_v60, %v1200_v0  ;;  %v1315_v31 = vld [vmem:[%s2556_s24 + $0x540] sm:$0xff]  ;;  %v1378_v0 = vpack.c.bf16 %v1252_v56, %v1246_v51  ;;  %v1386_v60 = vpack.c.bf16 %v1266_v48, %v1260_v44 }
 0x111   : > { %1962 = vmatmul.mubr.bf16.gmra.mrb[4].mxu0 %v1337_v33  ;;  %1675 = vmatprep.mubr.bf16.mxu1 %v1382_v40  ;;  %v1321_v33 = vld [vmem:[%s2556_s24 + $0x570] sm:$0xff]  ;;  %v1235_v40 = vld [vmem:[%s2556_s24 + $0x2c0] sm:$0xff] }
 0x112   : > { %2293 = vmatprep.mubr.msk.bf16.mxu0 %vm1507_vm1, %v1344_v42  ;;  %v1241_v42 = vld [vmem:[%s2556_s24 + $0x2f0] sm:$0xff]  ;;  %v1411_v3 = vpack.c.bf16 %v1321_v33, %v1315_v31  ;;  %v1294_v31 = vld [vmem:[%s2556_s24 + $0x498] sm:$0xff]  ;;  %v1300_v33 = vld [vmem:[%s2556_s24 + $0x4c8] sm:$0xff] }
 0x113   : > { %v1373_v50 = vpack.c.bf16 %v1241_v42, %v1235_v40  ;;  %v1308_v40 = vld [vmem:[%s2556_s24 + $0x508] sm:$0xff]  ;;  %v1314_v42 = vld [vmem:[%s2556_s24 + $0x538] sm:$0xff]  ;;  %v1402_v35 = vpack.c.bf16 %v1300_v33, %v1294_v31 }
 0x114   : > { %v1410_v37 = vpack.c.bf16 %v1314_v42, %v1308_v40 }
 0x118   : > { %1676 = vmatmul.mubr.bf16.gmra.mrb[36].mxu1 %v1381_v39  ;;  %v1233_v39 = vld [vmem:[%s2556_s24 + $0x2b0] sm:$0xff] }
 0x119   : > { %1972 = vmatmul.mubr.bf16.gmra.mrb[8].mxu0 %v1343_v41  ;;  %1685 = vmatprep.mubr.bf16.mxu1 %v1388_v54  ;;  %v1239_v41 = vld [vmem:[%s2556_s24 + $0x2e0] sm:$0xff] }
 0x11a   : > { %2294 = vmatprep.mubr.msk.bf16.mxu0 %vm1507_vm1, %v1350_v13  ;;  %v1247_v54 = vld [vmem:[%s2556_s24 + $0x320] sm:$0xff]  ;;  %v1253_v13 = vld [vmem:[%s2556_s24 + $0x350] sm:$0xff]  ;;  %v1371_v58 = vpack.c.bf16 %v1239_v41, %v1233_v39  ;;  %v1306_v39 = vld [vmem:[%s2556_s24 + $0x4f8] sm:$0xff] }
 0x11b   : > { %v1379_v62 = vpack.c.bf16 %v1253_v13, %v1247_v54  ;;  %v1312_v41 = vld [vmem:[%s2556_s24 + $0x528] sm:$0xff]  ;;  %v1326_v13 = vld [vmem:[%s2556_s24 + $0x598] sm:$0xff] }
 0x11c   : > { %v1320_v54 = vld [vmem:[%s2556_s24 + $0x568] sm:$0xff]  ;;  %v1408_v44 = vpack.c.bf16 %v1312_v41, %v1306_v39 }
 0x11d   : > { %v1416_v48 = vpack.c.bf16 %v1326_v13, %v1320_v54 }
 0x120   : > { %1686 = vmatmul.mubr.bf16.gmra.mrb[40].mxu1 %v1387_v2  ;;  %v1245_v2 = vld [vmem:[%s2556_s24 + $0x310] sm:$0xff] }
 0x121   : > { %1982 = vmatmul.mubr.bf16.gmra.mrb[12].mxu0 %v1349_v4  ;;  %1695 = vmatprep.mubr.bf16.mxu1 %v1394_v53  ;;  %v1251_v4 = vld [vmem:[%s2556_s24 + $0x340] sm:$0xff] }
 0x122   : > { %2295 = vmatprep.mubr.msk.bf16.mxu0 %vm1507_vm1, %v1356_v5  ;;  %v1259_v53 = vld [vmem:[%s2556_s24 + $0x380] sm:$0xff]  ;;  %v1265_v5 = vld [vmem:[%s2556_s24 + $0x3b0] sm:$0xff]  ;;  %v1377_v17 = vpack.c.bf16 %v1251_v4, %v1245_v2  ;;  %v1318_v2 = vld [vmem:[%s2556_s24 + $0x558] sm:$0xff] }
 0x123   : > { %v1385_v8 = vpack.c.bf16 %v1265_v5, %v1259_v53  ;;  %v1324_v4 = vld [vmem:[%s2556_s24 + $0x588] sm:$0xff] }
 0x124   : > { %v1414_v55 = vpack.c.bf16 %v1324_v4, %v1318_v2 }
 0x128   : > { %1696 = vmatmul.mubr.bf16.gmra.mrb[44].mxu1 %v1393_v12  ;;  %v1257_v12 = vld [vmem:[%s2556_s24 + $0x370] sm:$0xff] }
 0x129   : > { %1992 = vmatmul.mubr.bf16.gmra.mrb[16].mxu0 %v1355_v14  ;;  %1705 = vmatprep.mubr.bf16.mxu1 %v1400_v57  ;;  %v1263_v14 = vld [vmem:[%s2556_s24 + $0x3a0] sm:$0xff] }
 0x12a   : > { %2296 = vmatprep.mubr.msk.bf16.mxu0 %vm1507_vm1, %v1362_v19  ;;  %v1271_v57 = vld [vmem:[%s2556_s24 + $0x3e0] sm:$0xff]  ;;  %v1277_v19 = vld [vmem:[%s2556_s24 + $0x410] sm:$0xff]  ;;  %v1383_v21 = vpack.c.bf16 %v1263_v14, %v1257_v12 }
 0x12b   : > { %v1391_v43 = vpack.c.bf16 %v1277_v19, %v1271_v57 }
 0x130   : > { %1706 = vmatmul.mubr.bf16.gmra.mrb[48].mxu1 %v1399_v24  ;;  %v1269_v24 = vld [vmem:[%s2556_s24 + $0x3d0] sm:$0xff] }
 0x131   : > { %2002 = vmatmul.mubr.bf16.gmra.mrb[20].mxu0 %v1361_v25  ;;  %1715 = vmatprep.mubr.bf16.mxu1 %v1406_v61  ;;  %v1275_v25 = vld [vmem:[%s2556_s24 + $0x400] sm:$0xff] }
 0x132   : > { %2297 = vmatprep.mubr.msk.bf16.mxu0 %vm1507_vm1, %v1368_v26  ;;  %v1283_v61 = vld [vmem:[%s2556_s24 + $0x440] sm:$0xff]  ;;  %v1289_v26 = vld [vmem:[%s2556_s24 + $0x470] sm:$0xff]  ;;  %v1389_v45 = vpack.c.bf16 %v1275_v25, %v1269_v24 }
 0x133   : > { %v1397_v34 = vpack.c.bf16 %v1289_v26, %v1283_v61 }
 0x138   : > { %1716 = vmatmul.mubr.bf16.gmra.mrb[52].mxu1 %v1405_v36  ;;  %v1281_v36 = vld [vmem:[%s2556_s24 + $0x430] sm:$0xff] }
 0x139   : > { %2012 = vmatmul.mubr.bf16.gmra.mrb[24].mxu0 %v1367_v47  ;;  %1725 = vmatprep.mubr.bf16.mxu1 %v1412_v1  ;;  %v1287_v47 = vld [vmem:[%s2556_s24 + $0x460] sm:$0xff] }
 0x13a   : > { %2298 = vmatprep.mubr.msk.bf16.mxu0 %vm1507_vm1, %v1374_v38  ;;  %v1295_v1 = vld [vmem:[%s2556_s24 + $0x4a0] sm:$0xff]  ;;  %v1301_v38 = vld [vmem:[%s2556_s24 + $0x4d0] sm:$0xff]  ;;  %v1395_v46 = vpack.c.bf16 %v1287_v47, %v1281_v36 }
 0x13b   : > { %v1403_v49 = vpack.c.bf16 %v1301_v38, %v1295_v1 }
 0x140   : > { %1726 = vmatmul.mubr.bf16.gmra.mrb[56].mxu1 %v1411_v3  ;;  %v1293_v3 = vld [vmem:[%s2556_s24 + $0x490] sm:$0xff] }
 0x141   : > { %2022 = vmatmul.mubr.bf16.gmra.mrb[28].mxu0 %v1373_v50  ;;  %1838 = vmatprep.mubr.bf16.mxu1 %v1372_v52  ;;  %v1299_v50 = vld [vmem:[%s2556_s24 + $0x4c0] sm:$0xff] }
 0x142   : > { %2299 = vmatprep.mubr.msk.bf16.mxu0 %vm1507_vm1, %v1380_v10  ;;  %v1307_v52 = vld [vmem:[%s2556_s24 + $0x500] sm:$0xff]  ;;  %v1313_v10 = vld [vmem:[%s2556_s24 + $0x530] sm:$0xff]  ;;  %v1401_v51 = vpack.c.bf16 %v1299_v50, %v1293_v3 }
 0x143   : > { %v1409_v56 = vpack.c.bf16 %v1313_v10, %v1307_v52 }
 0x148   : > { %1839 = vmatmul.mubr.bf16.vlgmr.msra.gmra.mrb[28].mxu1 %v1371_v58  ;;  %v1305_v58 = vld [vmem:[%s2556_s24 + $0x4f0] sm:$0xff] }
 0x149   : > { %2032 = vmatmul.mubr.bf16.gmra.mrb[32].mxu0 %v1379_v62  ;;  %1848 = vmatprep.mubr.bf16.mxu1 %v1378_v0  ;;  %v1311_v62 = vld [vmem:[%s2556_s24 + $0x520] sm:$0xff] }
 0x14a   : > { %2300 = vmatprep.mubr.msk.bf16.mxu0 %vm1507_vm1, %v1386_v60  ;;  %v1319_v0 = vld [vmem:[%s2556_s24 + $0x560] sm:$0xff]  ;;  %v1325_v60 = vld [vmem:[%s2556_s24 + $0x590] sm:$0xff]  ;;  %v1407_v53 = vpack.c.bf16 %v1311_v62, %v1305_v58 }
 0x14b   : > { %v1415_v5 = vpack.c.bf16 %v1325_v60, %v1319_v0 }
 0x150   : > { %1849 = vmatmul.mubr.bf16.gmra.mrb[32].mxu1 %v1377_v17 }
 0x151   : > { %2042 = vmatmul.mubr.bf16.gmra.mrb[36].mxu0 %v1385_v8  ;;  %1858 = vmatprep.mubr.bf16.mxu1 %v1384_v9 }
 0x152   : > { %2301 = vmatprep.mubr.msk.bf16.mxu0 %vm1507_vm1, %v1392_v11 }
 0x158   : > { %1859 = vmatmul.mubr.bf16.gmra.mrb[36].mxu1 %v1383_v21 }
 0x159   : > { %2052 = vmatmul.mubr.bf16.gmra.mrb[40].mxu0 %v1391_v43  ;;  %1868 = vmatprep.mubr.bf16.mxu1 %v1390_v22 }
 0x15a   : > { %2302 = vmatprep.mubr.msk.bf16.mxu0 %vm1507_vm1, %v1398_v23 }
 0x160   : > { %1869 = vmatmul.mubr.bf16.gmra.mrb[40].mxu1 %v1389_v45 }
 0x161   : > { %2062 = vmatmul.mubr.bf16.gmra.mrb[44].mxu0 %v1397_v34  ;;  %1878 = vmatprep.mubr.bf16.mxu1 %v1396_v27 }
 0x162   : > { %2303 = vmatprep.mubr.msk.bf16.mxu0 %vm1507_vm1, %v1404_v29 }
 0x168   : > { %1879 = vmatmul.mubr.bf16.gmra.mrb[44].mxu1 %v1395_v46 }
 0x169   : > { %2072 = vmatmul.mubr.bf16.gmra.mrb[48].mxu0 %v1403_v49  ;;  %1888 = vmatprep.mubr.bf16.mxu1 %v1402_v35 }
 0x16a   : > { %2304 = vmatprep.mubr.msk.bf16.mxu0 %vm1507_vm1, %v1410_v37 }
 0x170   : > { %1889 = vmatmul.mubr.bf16.gmra.mrb[48].mxu1 %v1401_v51 }
 0x171   : > { %2082 = vmatmul.mubr.bf16.gmra.mrb[52].mxu0 %v1409_v56  ;;  %1898 = vmatprep.mubr.bf16.mxu1 %v1408_v44 }
 0x172   : > { %2305 = vmatprep.mubr.msk.bf16.mxu0 %vm1507_vm1, %v1416_v48 }
 0x178   : > { %1899 = vmatmul.mubr.bf16.gmra.mrb[52].mxu1 %v1407_v53 }
 0x179   : > { %2092 = vmatmul.mubr.bf16.gmra.mrb[56].mxu0 %v1415_v5  ;;  %1908 = vmatprep.mubr.bf16.mxu1 %v1414_v55 }
 0x180   : > { %1909 = vmatmul.mubr.bf16.gmra.mrb[56].mxu1 %v1413_v7 }
 0x1a3   : > { %v1587_v17 = vpop.f32.mrb[0].mxu1 }
 0x1a4   : > { %v1589_v8 = vpop.f32.mrb[1].mxu1 }
 0x1a5   : > { %v1591_v9 = vpop.f32.mrb[2].mxu1 }
 0x1a6   : > { %v1593_v11 = vpop.f32.mrb[3].mxu1 }
 0x1ab   : > { %v1597_v12 = vpop.f32.mrb[4].mxu1 }
 0x1ac   : > { %v1599_v14 = vpop.f32.mrb[5].mxu1 }
 0x1ad   : > { %v1601_v57 = vpop.f32.mrb[6].mxu1 }
 0x1ae   : > { %v1603_v19 = vpop.f32.mrb[7].mxu1 }
 0x1b3   : > { %v1607_v59 = vpop.f32.mrb[8].mxu1 }
 0x1b4   : > { %v1609_v16 = vpop.f32.mrb[9].mxu1 }
 0x1b5   : > { %v1611_v18 = vpop.f32.mrb[10].mxu1 }
 0x1b6   : > { %v1613_v20 = vpop.f32.mrb[11].mxu1 }
 0x1bb   : > { %v1617_v21 = vpop.f32.mrb[12].mxu1 }
 0x1bc   : > { %v1619_v43 = vpop.f32.mrb[13].mxu1 }
 0x1bd   : > { %v1621_v22 = vpop.f32.mrb[14].mxu1 }
 0x1be   : > { %v1623_v23 = vpop.f32.mrb[15].mxu1 }
 0x1c3   : > { %v1627_v24 = vpop.f32.mrb[16].mxu1 }
 0x1c4   : > { %v4006_v25 = vpop.f32.mrb[17].mxu1 }
 0x1c5   : > { %v4008_v61 = vpop.f32.mrb[18].mxu1 }
 0x1c6   : > { %v4010_v26 = vpop.f32.mrb[19].mxu1 }
 0x1cb   : > { %v4012_v28 = vpop.f32.mrb[20].mxu1 }
 0x1cc   : > { %v4014_v63 = vpop.f32.mrb[21].mxu1 }
 0x1cd   : > { %v4016_v30 = vpop.f32.mrb[22].mxu1 }
 0x1ce   : > { %v4018_v32 = vpop.f32.mrb[23].mxu1 }
 0x1d3   : > { %v4020_v45 = vpop.f32.mrb[24].mxu1 }
 0x1d4   : > { %v4022_v34 = vpop.f32.mrb[25].mxu1 }
 0x1d5   : > { %v4024_v27 = vpop.f32.mrb[26].mxu1 }
 0x1d6   : > { %v4026_v29 = vpop.f32.mrb[27].mxu1 }
 0x1dc   : > { %v1953_v36 = vpop.f32.mrb[0].mxu0 }
 0x1dd   : > { %v2341_v47 = vadd.f32 %v1953_v36, %v1587_v17  ;;  %v1955_v1 = vpop.f32.mrb[1].mxu0 }
 0x1de   : > { %v2342_v38 = vadd.f32 %v1955_v1, %v1589_v8  ;;  %v1957_v31 = vpop.f32.mrb[2].mxu0 }
 0x1df   : > { %2102 = vst [vmem:[%s2551_s21] sm:$0xff] %v2341_v47  ;;  %v2343_v33 = vadd.f32 %v1957_v31, %v1591_v9  ;;  %v1959_v40 = vpop.f32.mrb[3].mxu0 }
 0x1e0   : > { %2104 = vst.msk [vmem:[%s2551_s21 + $0x8] sm:$0xff] %vm2103_vm2, %v2342_v38  ;;  %v2344_v42 = vadd.f32 %v1959_v40, %v1593_v11 }
 0x1e1   : > { %2105 = vst [vmem:[%s2551_s21 + $0x10] sm:$0xff] %v2343_v33 }
 0x1e2   : > { %2106 = vst.msk [vmem:[%s2551_s21 + $0x18] sm:$0xff] %vm2103_vm2, %v2344_v42 }
 0x1e4   : > { %v1963_v46 = vpop.f32.mrb[4].mxu0 }
 0x1e5   : > { %v2345_v49 = vadd.f32 %v1963_v46, %v1597_v12  ;;  %v1965_v35 = vpop.f32.mrb[5].mxu0 }
 0x1e6   : > { %v2346_v37 = vadd.f32 %v1965_v35, %v1599_v14  ;;  %v1967_v3 = vpop.f32.mrb[6].mxu0 }
 0x1e7   : > { %2107 = vst [vmem:[%s2551_s21 + $0x20] sm:$0xff] %v2345_v49  ;;  %v2347_v50 = vadd.f32 %v1967_v3, %v1601_v57  ;;  %v1969_v52 = vpop.f32.mrb[7].mxu0 }
 0x1e8   : > { %2108 = vst.msk [vmem:[%s2551_s21 + $0x28] sm:$0xff] %vm2103_vm2, %v2346_v37  ;;  %v2348_v10 = vadd.f32 %v1969_v52, %v1603_v19 }
 0x1e9   : > { %2109 = vst [vmem:[%s2551_s21 + $0x30] sm:$0xff] %v2347_v50 }
 0x1ea   : > { %2110 = vst.msk [vmem:[%s2551_s21 + $0x38] sm:$0xff] %vm2103_vm2, %v2348_v10 }
 0x1ec   : > { %v1973_v39 = vpop.f32.mrb[8].mxu0 }
 0x1ed   : > { %v2349_v41 = vadd.f32 %v1973_v39, %v1607_v59  ;;  %v1975_v54 = vpop.f32.mrb[9].mxu0 }
 0x1ee   : > { %v2350_v13 = vadd.f32 %v1975_v54, %v1609_v16  ;;  %v1977_v51 = vpop.f32.mrb[10].mxu0 }
 0x1ef   : > { %2111 = vst [vmem:[%s2551_s21 + $0x40] sm:$0xff] %v2349_v41  ;;  %v2351_v56 = vadd.f32 %v1977_v51, %v1611_v18  ;;  %v1979_v44 = vpop.f32.mrb[11].mxu0 }
 0x1f0   : > { %2112 = vst.msk [vmem:[%s2551_s21 + $0x48] sm:$0xff] %vm2103_vm2, %v2350_v13  ;;  %v2352_v48 = vadd.f32 %v1979_v44, %v1613_v20 }
 0x1f1   : > { %2113 = vst [vmem:[%s2551_s21 + $0x50] sm:$0xff] %v2351_v56 }
 0x1f2   : > { %2114 = vst.msk [vmem:[%s2551_s21 + $0x58] sm:$0xff] %vm2103_vm2, %v2352_v48 }
 0x1f4   : > { %v1983_v58 = vpop.f32.mrb[12].mxu0 }
 0x1f5   : > { %v2353_v62 = vadd.f32 %v1983_v58, %v1617_v21  ;;  %v1985_v0 = vpop.f32.mrb[13].mxu0 }
 0x1f6   : > { %v2354_v60 = vadd.f32 %v1985_v0, %v1619_v43  ;;  %v1987_v2 = vpop.f32.mrb[14].mxu0 }
 0x1f7   : > { %2115 = vst [vmem:[%s2551_s21 + $0x60] sm:$0xff] %v2353_v62  ;;  %v2355_v4 = vadd.f32 %v1987_v2, %v1621_v22  ;;  %v1989_v53 = vpop.f32.mrb[15].mxu0 }
 0x1f8   : > { %2116 = vst.msk [vmem:[%s2551_s21 + $0x68] sm:$0xff] %vm2103_vm2, %v2354_v60  ;;  %v2356_v5 = vadd.f32 %v1989_v53, %v1623_v23 }
 0x1f9   : > { %2117 = vst [vmem:[%s2551_s21 + $0x70] sm:$0xff] %v2355_v4 }
 0x1fa   : > { %2118 = vst.msk [vmem:[%s2551_s21 + $0x78] sm:$0xff] %vm2103_vm2, %v2356_v5 }
 0x1fc   : > { %v1993_v55 = vpop.f32.mrb[16].mxu0 }
 0x1fd   : > { %v2357_v15 = vadd.f32 %v1993_v55, %v1627_v24  ;;  %v1995_v6 = vpop.f32.mrb[17].mxu0 }
 0x1fe   : > { %v2358_v7 = vadd.f32 %v1995_v6, %v4006_v25  ;;  %v1997_v17 = vpop.f32.mrb[18].mxu0 }
 0x1ff   : > { %2119 = vst [vmem:[%s2551_s21 + $0x80] sm:$0xff] %v2357_v15  ;;  %v2359_v8 = vadd.f32 %v1997_v17, %v4008_v61  ;;  %v1999_v9 = vpop.f32.mrb[19].mxu0 }
 0x200   : > { %2120 = vst.msk [vmem:[%s2551_s21 + $0x88] sm:$0xff] %vm2103_vm2, %v2358_v7  ;;  %v2360_v11 = vadd.f32 %v1999_v9, %v4010_v26 }
 0x201   : > { %2121 = vst [vmem:[%s2551_s21 + $0x90] sm:$0xff] %v2359_v8 }
 0x202   : > { %2122 = vst.msk [vmem:[%s2551_s21 + $0x98] sm:$0xff] %vm2103_vm2, %v2360_v11 }
 0x204   : > { %v2003_v12 = vpop.f32.mrb[20].mxu0 }
 0x205   : > { %v2361_v14 = vadd.f32 %v2003_v12, %v4012_v28  ;;  %v2005_v57 = vpop.f32.mrb[21].mxu0 }
 0x206   : > { %v2362_v19 = vadd.f32 %v2005_v57, %v4014_v63  ;;  %v2007_v59 = vpop.f32.mrb[22].mxu0 }
 0x207   : > { %2123 = vst [vmem:[%s2551_s21 + $0xa0] sm:$0xff] %v2361_v14  ;;  %v2363_v16 = vadd.f32 %v2007_v59, %v4016_v30  ;;  %v2009_v18 = vpop.f32.mrb[23].mxu0 }
 0x208   : > { %2124 = vst.msk [vmem:[%s2551_s21 + $0xa8] sm:$0xff] %vm2103_vm2, %v2362_v19  ;;  %v2364_v20 = vadd.f32 %v2009_v18, %v4018_v32 }
 0x209   : > { %2125 = vst [vmem:[%s2551_s21 + $0xb0] sm:$0xff] %v2363_v16 }
 0x20a   : > { %2126 = vst.msk [vmem:[%s2551_s21 + $0xb8] sm:$0xff] %vm2103_vm2, %v2364_v20 }
 0x20c   : > { %v2013_v21 = vpop.f32.mrb[24].mxu0 }
 0x20d   : > { %v2365_v43 = vadd.f32 %v2013_v21, %v4020_v45  ;;  %v2015_v22 = vpop.f32.mrb[25].mxu0 }
 0x20e   : > { %v2366_v23 = vadd.f32 %v2015_v22, %v4022_v34  ;;  %v2017_v24 = vpop.f32.mrb[26].mxu0 }
 0x20f   : > { %2127 = vst [vmem:[%s2551_s21 + $0xc0] sm:$0xff] %v2365_v43  ;;  %v2367_v25 = vadd.f32 %v2017_v24, %v4024_v27  ;;  %v2019_v61 = vpop.f32.mrb[27].mxu0 }
 0x210   : > { %2128 = vst.msk [vmem:[%s2551_s21 + $0xc8] sm:$0xff] %vm2103_vm2, %v2366_v23  ;;  %v2368_v26 = vadd.f32 %v2019_v61, %v4026_v29 }
 0x211   : > { %2129 = vst [vmem:[%s2551_s21 + $0xd0] sm:$0xff] %v2367_v25 }
 0x212   : > { %2130 = vst.msk [vmem:[%s2551_s21 + $0xd8] sm:$0xff] %vm2103_vm2, %v2368_v26 }
 0x214   : > { %v2023_v28 = vpop.f32.mrb[28].mxu0 }
 0x215   : > { %v2025_v63 = vpop.f32.mrb[29].mxu0 }
 0x216   : > { %v2027_v30 = vpop.f32.mrb[30].mxu0 }
 0x217   : > { %v2029_v32 = vpop.f32.mrb[31].mxu0 }
 0x21b   : > { %v1840_v45 = vpop.f32.mrb[28].mxu1 }
 0x21c   : > { %v2033_v34 = vpop.f32.mrb[32].mxu0  ;;  %v2369_v36 = vadd.f32 %v2023_v28, %v1840_v45  ;;  %v1842_v27 = vpop.f32.mrb[29].mxu1 }
 0x21d   : > { %v2035_v47 = vpop.f32.mrb[33].mxu0  ;;  %v2370_v1 = vadd.f32 %v2025_v63, %v1842_v27  ;;  %v1844_v38 = vpop.f32.mrb[30].mxu1 }
 0x21e   : > { %v2037_v31 = vpop.f32.mrb[34].mxu0  ;;  %2131 = vst [vmem:[%s2551_s21 + $0xe0] sm:$0xff] %v2369_v36  ;;  %v2371_v29 = vadd.f32 %v2027_v30, %v1844_v38  ;;  %v1846_v33 = vpop.f32.mrb[31].mxu1 }
 0x21f   : > { %v2039_v40 = vpop.f32.mrb[35].mxu0  ;;  %2132 = vst.msk [vmem:[%s2551_s21 + $0xe8] sm:$0xff] %vm2103_vm2, %v2370_v1  ;;  %v2372_v42 = vadd.f32 %v2029_v32, %v1846_v33 }
 0x220   : > { %2133 = vst [vmem:[%s2551_s21 + $0xf0] sm:$0xff] %v2371_v29 }
 0x221   : > { %2134 = vst.msk [vmem:[%s2551_s21 + $0xf8] sm:$0xff] %vm2103_vm2, %v2372_v42 }
 0x223   : > { %v1850_v46 = vpop.f32.mrb[32].mxu1 }
 0x224   : > { %v2043_v49 = vpop.f32.mrb[36].mxu0  ;;  %v2373_v35 = vadd.f32 %v2033_v34, %v1850_v46  ;;  %v1852_v37 = vpop.f32.mrb[33].mxu1 }
 0x225   : > { %v2045_v3 = vpop.f32.mrb[37].mxu0  ;;  %v2374_v50 = vadd.f32 %v2035_v47, %v1852_v37  ;;  %v1854_v52 = vpop.f32.mrb[34].mxu1 }
 0x226   : > { %v2047_v10 = vpop.f32.mrb[38].mxu0  ;;  %2135 = vst [vmem:[%s2551_s21 + $0x100] sm:$0xff] %v2373_v35  ;;  %v2375_v39 = vadd.f32 %v2037_v31, %v1854_v52  ;;  %v1856_v41 = vpop.f32.mrb[35].mxu1 }
 0x227   : > { %v2049_v54 = vpop.f32.mrb[39].mxu0  ;;  %2136 = vst.msk [vmem:[%s2551_s21 + $0x108] sm:$0xff] %vm2103_vm2, %v2374_v50  ;;  %v2376_v13 = vadd.f32 %v2039_v40, %v1856_v41 }
 0x228   : > { %2137 = vst [vmem:[%s2551_s21 + $0x110] sm:$0xff] %v2375_v39 }
 0x229   : > { %2138 = vst.msk [vmem:[%s2551_s21 + $0x118] sm:$0xff] %vm2103_vm2, %v2376_v13 }
 0x22b   : > { %v1860_v51 = vpop.f32.mrb[36].mxu1 }
 0x22c   : > { %v2053_v56 = vpop.f32.mrb[40].mxu0  ;;  %v2377_v44 = vadd.f32 %v2043_v49, %v1860_v51  ;;  %v1862_v48 = vpop.f32.mrb[37].mxu1 }
 0x22d   : > { %v2055_v58 = vpop.f32.mrb[41].mxu0  ;;  %v2378_v62 = vadd.f32 %v2045_v3, %v1862_v48  ;;  %v1864_v0 = vpop.f32.mrb[38].mxu1 }
 0x22e   : > { %v2057_v60 = vpop.f32.mrb[42].mxu0  ;;  %2139 = vst [vmem:[%s2551_s21 + $0x120] sm:$0xff] %v2377_v44  ;;  %v2379_v2 = vadd.f32 %v2047_v10, %v1864_v0  ;;  %v1866_v4 = vpop.f32.mrb[39].mxu1 }
 0x22f   : > { %v2059_v53 = vpop.f32.mrb[43].mxu0  ;;  %2140 = vst.msk [vmem:[%s2551_s21 + $0x128] sm:$0xff] %vm2103_vm2, %v2378_v62  ;;  %v2380_v5 = vadd.f32 %v2049_v54, %v1866_v4 }
 0x230   : > { %2141 = vst [vmem:[%s2551_s21 + $0x130] sm:$0xff] %v2379_v2 }
 0x231   : > { %2142 = vst.msk [vmem:[%s2551_s21 + $0x138] sm:$0xff] %vm2103_vm2, %v2380_v5 }
 0x233   : > { %v1870_v55 = vpop.f32.mrb[40].mxu1 }
 0x234   : > { %v2063_v15 = vpop.f32.mrb[44].mxu0  ;;  %v2381_v6 = vadd.f32 %v2053_v56, %v1870_v55  ;;  %v1872_v7 = vpop.f32.mrb[41].mxu1 }
 0x235   : > { %v2065_v17 = vpop.f32.mrb[45].mxu0  ;;  %v2382_v8 = vadd.f32 %v2055_v58, %v1872_v7  ;;  %v1874_v9 = vpop.f32.mrb[42].mxu1 }
 0x236   : > { %v2067_v11 = vpop.f32.mrb[46].mxu0  ;;  %2143 = vst [vmem:[%s2551_s21 + $0x140] sm:$0xff] %v2381_v6  ;;  %v2383_v12 = vadd.f32 %v2057_v60, %v1874_v9  ;;  %v1876_v14 = vpop.f32.mrb[43].mxu1 }
 0x237   : > { %v2069_v57 = vpop.f32.mrb[47].mxu0  ;;  %2144 = vst.msk [vmem:[%s2551_s21 + $0x148] sm:$0xff] %vm2103_vm2, %v2382_v8  ;;  %v2384_v19 = vadd.f32 %v2059_v53, %v1876_v14 }
 0x238   : > { %2145 = vst [vmem:[%s2551_s21 + $0x150] sm:$0xff] %v2383_v12 }
 0x239   : > { %2146 = vst.msk [vmem:[%s2551_s21 + $0x158] sm:$0xff] %vm2103_vm2, %v2384_v19 }
 0x23b   : > { %v1880_v59 = vpop.f32.mrb[44].mxu1 }
 0x23c   : > { %v2073_v16 = vpop.f32.mrb[48].mxu0  ;;  %v2385_v18 = vadd.f32 %v2063_v15, %v1880_v59  ;;  %v1882_v20 = vpop.f32.mrb[45].mxu1 }
 0x23d   : > { %v2075_v21 = vpop.f32.mrb[49].mxu0  ;;  %v2386_v43 = vadd.f32 %v2065_v17, %v1882_v20  ;;  %v1884_v22 = vpop.f32.mrb[46].mxu1 }
 0x23e   : > { %v2077_v23 = vpop.f32.mrb[50].mxu0  ;;  %2147 = vst [vmem:[%s2551_s21 + $0x160] sm:$0xff] %v2385_v18  ;;  %v2387_v24 = vadd.f32 %v2067_v11, %v1884_v22  ;;  %v1886_v25 = vpop.f32.mrb[47].mxu1 }
 0x23f   : > { %v2079_v61 = vpop.f32.mrb[51].mxu0  ;;  %2148 = vst.msk [vmem:[%s2551_s21 + $0x168] sm:$0xff] %vm2103_vm2, %v2386_v43  ;;  %v2388_v26 = vadd.f32 %v2069_v57, %v1886_v25 }
 0x240   : > { %2149 = vst [vmem:[%s2551_s21 + $0x170] sm:$0xff] %v2387_v24 }
 0x241   : > { %2150 = vst.msk [vmem:[%s2551_s21 + $0x178] sm:$0xff] %vm2103_vm2, %v2388_v26 }
 0x243   : > { %v1890_v28 = vpop.f32.mrb[48].mxu1 }
 0x244   : > { %v2083_v63 = vpop.f32.mrb[52].mxu0  ;;  %v2389_v30 = vadd.f32 %v2073_v16, %v1890_v28  ;;  %v1892_v32 = vpop.f32.mrb[49].mxu1 }
 0x245   : > { %v2085_v45 = vpop.f32.mrb[53].mxu0  ;;  %v2390_v34 = vadd.f32 %v2075_v21, %v1892_v32  ;;  %v1894_v36 = vpop.f32.mrb[50].mxu1 }
 0x246   : > { %v2087_v27 = vpop.f32.mrb[54].mxu0  ;;  %2151 = vst [vmem:[%s2551_s21 + $0x180] sm:$0xff] %v2389_v30  ;;  %v2391_v47 = vadd.f32 %v2077_v23, %v1894_v36  ;;  %v1896_v1 = vpop.f32.mrb[51].mxu1 }
 0x247   : > { %v2089_v38 = vpop.f32.mrb[55].mxu0  ;;  %2152 = vst.msk [vmem:[%s2551_s21 + $0x188] sm:$0xff] %vm2103_vm2, %v2390_v34  ;;  %v2392_v31 = vadd.f32 %v2079_v61, %v1896_v1 }
 0x248   : > { %2153 = vst [vmem:[%s2551_s21 + $0x190] sm:$0xff] %v2391_v47 }
 0x249   : > { %2154 = vst.msk [vmem:[%s2551_s21 + $0x198] sm:$0xff] %vm2103_vm2, %v2392_v31 }
 0x24b   : > { %v1900_v29 = vpop.f32.mrb[52].mxu1 }
 0x24c   : > { %v2093_v33 = vpop.f32.mrb[56].mxu0  ;;  %v2393_v40 = vadd.f32 %v2083_v63, %v1900_v29  ;;  %v1902_v42 = vpop.f32.mrb[53].mxu1 }
 0x24d   : > { %v2095_v46 = vpop.f32.mrb[57].mxu0  ;;  %v2394_v49 = vadd.f32 %v2085_v45, %v1902_v42  ;;  %v1904_v35 = vpop.f32.mrb[54].mxu1 }
 0x24e   : > { %v2097_v37 = vpop.f32.mrb[58].mxu0  ;;  %2155 = vst [vmem:[%s2551_s21 + $0x1a0] sm:$0xff] %v2393_v40  ;;  %v2395_v3 = vadd.f32 %v2087_v27, %v1904_v35  ;;  %v1906_v50 = vpop.f32.mrb[55].mxu1 }
 0x24f   : > { %v2099_v52 = vpop.f32.mrb[59].mxu0  ;;  %2156 = vst.msk [vmem:[%s2551_s21 + $0x1a8] sm:$0xff] %vm2103_vm2, %v2394_v49  ;;  %v2396_v10 = vadd.f32 %v2089_v38, %v1906_v50 }
 0x250   : > { %2157 = vst [vmem:[%s2551_s21 + $0x1b0] sm:$0xff] %v2395_v3 }
 0x251   : > { %2158 = vst.msk [vmem:[%s2551_s21 + $0x1b8] sm:$0xff] %vm2103_vm2, %v2396_v10 }
 0x253   : > { %v1910_v39 = vpop.f32.mrb[56].mxu1 }
 0x254   : > { %v2397_v41 = vadd.f32 %v2093_v33, %v1910_v39  ;;  %v1912_v54 = vpop.f32.mrb[57].mxu1 }
 0x255   : > { %v2398_v13 = vadd.f32 %v2095_v46, %v1912_v54  ;;  %v1914_v51 = vpop.f32.mrb[58].mxu1 }
 0x256   : > { %2159 = vst [vmem:[%s2551_s21 + $0x1c0] sm:$0xff] %v2397_v41  ;;  %v2399_v56 = vadd.f32 %v2097_v37, %v1914_v51  ;;  %v1916_v44 = vpop.f32.mrb[59].mxu1 }
 0x257   : > { %2160 = vst.msk [vmem:[%s2551_s21 + $0x1c8] sm:$0xff] %vm2103_vm2, %v2398_v13  ;;  %v2400_v48 = vadd.f32 %v2099_v52, %v1916_v44 }
 0x258   : > { %2161 = vst [vmem:[%s2551_s21 + $0x1d0] sm:$0xff] %v2399_v56 }
 0x259   : > { %2162 = vst.msk [vmem:[%s2551_s21 + $0x1d8] sm:$0xff] %vm2103_vm2, %v2400_v48 }
 0x25a PF: > { %s13_s14 = sadd.s32 1, %s2508_s14   ;;  %s4142_s12 = smov %s2504_s13 }
 0x25b   : > { %p10_p6 = scmp.ge.s32.totalorder %s13_s14, 5   ;;  %s4143_s13 = smov %s4145_s15 }
 0x25d   :  { %12 = sbr.rel (!%p10_p6) target bundleno = 2 (0x2), region = 72 }

</bundles_post_ra>
